<compile_context>
chip_gen: v7x
topology: tpu7x:2x2x1
jax: 0.10.0
libtpu: 0.0.40
codegen_flags: <defaults>
</compile_context>

<pallas_src>
from functools import partial

import jax
import jax.numpy as jnp
import numpy as np
from jax import lax
from jax.experimental import pallas as pl
from jax.experimental.pallas import tpu as pltpu

EPS = 1e-5  # PyTorch BatchNorm3d default eps


# ------------------------------ fused kernel --------------------------------
def _bottleneck_kernel(x_ref, w1_ref, w3_ref, mw_ref, pmid_ref, pout_ref,
                       out_ref, *, dim_d, dim_h, dim_w, eps):
    L = x_ref.shape[1]                       # N * D * H * W (lane axis)
    inv_m = 1.0 / float(L)
    hw = dim_h * dim_w

    def bn_scale_bias(pre, gamma, beta):
        # single-pass training-mode batch norm folded into one scale + bias
        s = jnp.sum(pre, axis=1, keepdims=True)
        ss = jnp.sum(pre * pre, axis=1, keepdims=True)
        mean = s * inv_m
        var = jnp.maximum(ss * inv_m - mean * mean, 0.0)   # biased variance
        scale = gamma * lax.rsqrt(var + eps)
        bias = beta - scale * mean
        return scale, bias

    # -------- stage 1: 1x1x1 conv (one MXU matmul) + BN1 + ReLU --------------
    pre1 = jnp.dot(w1_ref[...], x_ref[...],
                   preferred_element_type=jnp.float32)        # (mid, L)
    scale1, bias1 = bn_scale_bias(pre1, pmid_ref[:, 0:1], pmid_ref[:, 1:2])
    a1 = jnp.maximum(scale1 * pre1 + bias1, 0.0)

    # -------- stage 2: depthwise 3x3x3 conv: 27 rolls x masked weights -------
    # mw_ref[tap] = (zero-padding boundary mask) * w2[:, tap], precomputed in
    # the wrapper, so the inner body is roll + mul + add (streamed from VMEM).
    # Circular roll never leaks across D/H/W (or batch) boundaries because the
    # corresponding boundary mask is zero there.
    acc = jnp.zeros_like(a1)
    tap = 0
    for kd in (-1, 0, 1):
        for kh in (-1, 0, 1):
            for kw in (-1, 0, 1):
                off = kd * hw + kh * dim_w + kw
                shifted = a1 if off == 0 else pltpu.roll(a1, (-off) % L, 1)
                acc = acc + shifted * mw_ref[tap]
                tap += 1
    scale2, bias2 = bn_scale_bias(acc, pmid_ref[:, 2:3], pmid_ref[:, 3:4])
    a2 = jnp.maximum(scale2 * acc + bias2, 0.0)

    # -------- stage 3: 1x1x1 conv written straight into out_ref + BN3 stats --
    pre3 = jnp.dot(w3_ref[...], a2,
                   preferred_element_type=jnp.float32)        # (cout, L)
    out_ref[...] = pre3
    scale3, bias3 = bn_scale_bias(pre3, pout_ref[:, 0:1], pout_ref[:, 1:2])

    # -------- stage 4: BN3 + identity residual + ReLU, in place --------------
    out_ref[...] = jnp.maximum(scale3 * out_ref[...] + bias3 + x_ref[...], 0.0)


# ------------------------------ forward wrapper ------------------------------
@partial(jax.jit, static_argnames=("cardinality",))
def resnext_bottleneck_forward(x, w1, g1, b1, w2, g2, b2, w3, g3, b3, cardinality):
    """x: (N, Cin, D, H, W) NCDHW, returns (N, Cout, D, H, W)."""
    n, cin, d, h, w_ = x.shape
    dhw = d * h * w_
    L = n * dhw
    mid = w1.shape[0]
    cout = w3.shape[0]
    cpg = mid // cardinality
    assert cpg == 1, "only channels_per_group == 1 (depthwise) conv2 implemented"
    assert cin == cout, "identity residual requires inplanes == planes*expansion"

    # (N, Cin, D, H, W) -> (Cin, N*DHW): one tiny transpose, lane-dense slab.
    x2 = x.reshape(n, cin, dhw).transpose(1, 0, 2).reshape(cin, L)
    w1m = w1.reshape(mid, cin)                                 # (mid, Cin)
    w3m = w3.reshape(cout, mid)                                # (Cout, mid)

    # Precomputed per-tap masked depthwise weights:
    #   mw[tap, c, l] = w2[c, tap] * zero_padding_mask[tap, l]
    lane = jnp.arange(L, dtype=jnp.int32)
    sp = lane % dhw
    wp = sp % w_
    hp = (sp // w_) % h
    dp = (sp // (h * w_)) % d          # mod d: correct for every batch sample
    masks = []
    for kd in (-1, 0, 1):
        for kh in (-1, 0, 1):
            for kw in (-1, 0, 1):
                valid = ((dp + kd >= 0) & (dp + kd < d)
                         & (hp + kh >= 0) & (hp + kh < h)
                         & (wp + kw >= 0) & (wp + kw < w_))
                masks.append(valid)
    mask = jnp.stack(masks).astype(jnp.float32)                # (27, L)
    w2t = w2.reshape(mid, 27).T                                # (27, mid)
    mw = w2t[:, :, None] * mask[:, None, :]                    # (27, mid, L)

    # Packed BN affine parameters (2 inputs instead of 6).
    pmid = jnp.stack([g1, b1, g2, b2], axis=1)                 # (mid, 4)
    pout = jnp.stack([g3, b3], axis=1)                         # (cout, 2)

    kern = partial(_bottleneck_kernel, dim_d=d, dim_h=h, dim_w=w_, eps=EPS)
    vmem = pltpu.MemorySpace.VMEM
    out = pl.pallas_call(
        kern,
        out_shape=jax.ShapeDtypeStruct((cout, L), jnp.float32),
        in_specs=[pl.BlockSpec(memory_space=vmem)] * 6,
        out_specs=pl.BlockSpec(memory_space=vmem),
    )(x2, w1m, w3m, mw, pmid, pout)

    return out.reshape(cout, n, dhw).transpose(1, 0, 2).reshape(n, cout, d, h, w_)


# ----------------------------- pure-JAX reference ----------------------------
def _bn_train(y, gamma, beta):
    mean = y.mean(axis=(0, 2, 3, 4), keepdims=True)
    var = ((y - mean) ** 2).mean(axis=(0, 2, 3, 4), keepdims=True)
    return gamma.reshape(1, -1, 1, 1, 1) * (y - mean) / jnp.sqrt(var + EPS) \
        + beta.reshape(1, -1, 1, 1, 1)


def reference_forward(x, w1, g1, b1, w2, g2, b2, w3, g3, b3, cardinality):
    dn = ("NCDHW", "OIDHW", "NCDHW")
    hp = lax.Precision.HIGHEST
    y = lax.conv_general_dilated(x, w1, (1, 1, 1), "VALID",
                                 dimension_numbers=dn, precision=hp)
    y = jax.nn.relu(_bn_train(y, g1, b1))
    y = lax.conv_general_dilated(y, w2, (1, 1, 1), [(1, 1)] * 3,
                                 dimension_numbers=dn,
                                 feature_group_count=cardinality, precision=hp)
    y = jax.nn.relu(_bn_train(y, g2, b2))
    y = lax.conv_general_dilated(y, w3, (1, 1, 1), "VALID",
                                 dimension_numbers=dn, precision=hp)
    y = _bn_train(y, g3, b3) + x
    return jax.nn.relu(y)


# ----------------------------------- main ------------------------------------
if __name__ == "__main__":
    key = jax.random.PRNGKey(0)

    # Module config: ResNeXtBottleneck(inplanes=64, planes=32, cardinality=4)
    planes, cardinality, expansion = 32, 4, 2
    inplanes = planes * expansion            # 64 -> identity residual works
    mid = cardinality * (planes // 32)       # 4
    n, d, h, w_ = 2, 4, 8, 8

    ks = jax.random.split(key, 10)
    x = jax.random.normal(ks[0], (n, inplanes, d, h, w_), jnp.float32)

    w1 = 0.1 * jax.random.normal(ks[1], (mid, inplanes, 1, 1, 1), jnp.float32)
    w2 = 0.1 * jax.random.normal(ks[2], (mid, mid // cardinality, 3, 3, 3), jnp.float32)
    w3 = 0.1 * jax.random.normal(ks[3], (planes * expansion, mid, 1, 1, 1), jnp.float32)

    g1 = 1.0 + 0.1 * jax.random.normal(ks[4], (mid,), jnp.float32)
    b1 = 0.1 * jax.random.normal(ks[5], (mid,), jnp.float32)
    g2 = 1.0 + 0.1 * jax.random.normal(ks[6], (mid,), jnp.float32)
    b2 = 0.1 * jax.random.normal(ks[7], (mid,), jnp.float32)
    g3 = 1.0 + 0.1 * jax.random.normal(ks[8], (planes * expansion,), jnp.float32)
    b3 = 0.1 * jax.random.normal(ks[9], (planes * expansion,), jnp.float32)

    out = resnext_bottleneck_forward(x, w1, g1, b1, w2, g2, b2, w3, g3, b3,
                                     cardinality)
    out = jax.block_until_ready(out)

    ref = jax.block_until_ready(
        reference_forward(x, w1, g1, b1, w2, g2, b2, w3, g3, b3, cardinality))
    np.testing.assert_allclose(np.asarray(out), np.asarray(ref), rtol=1e-2, atol=1e-2)

    print("KERNEL_OK")
</pallas_src>

<mosaic_0001>
module attributes {stable_mosaic.version = 11 : i64} {
  func.func @_bottleneck_kernel(%arg0: memref<64x512xf32, #tpu.memory_space<vmem>>, %arg1: memref<4x64xf32, #tpu.memory_space<vmem>>, %arg2: memref<64x4xf32, #tpu.memory_space<vmem>>, %arg3: memref<27x4x512xf32, #tpu.memory_space<vmem>>, %arg4: memref<4x4xf32, #tpu.memory_space<vmem>>, %arg5: memref<64x2xf32, #tpu.memory_space<vmem>>, %arg6: memref<64x512xf32, #tpu.memory_space<vmem>>) attributes {dimension_semantics = [], scalar_prefetch = 0 : i64, scratch_operands = 0 : i64, tpu.core_type = #tpu.core_type<tc>} {
    %c0 = arith.constant 0 : index
    %c0_0 = arith.constant 0 : index
    %0 = vector.load %arg1[%c0, %c0_0] : memref<4x64xf32, #tpu.memory_space<vmem>>, vector<4x64xf32>
    %c0_1 = arith.constant 0 : index
    %c0_2 = arith.constant 0 : index
    %1 = vector.load %arg0[%c0_1, %c0_2] : memref<64x512xf32, #tpu.memory_space<vmem>>, vector<64x512xf32>
    %cst = arith.constant dense<0.000000e+00> : vector<4x512xf32>
    %2 = tpu.matmul %0, %1, %cst {dimension_numbers = #tpu.dot_dimension_numbers<[1], [0], [0], [1], [0, 0, 1, 1], [], []>} : vector<4x64xf32>, vector<64x512xf32>, vector<4x512xf32> -> vector<4x512xf32>
    %c0_3 = arith.constant 0 : index
    %c0_4 = arith.constant 0 : index
    %3 = vector.load %arg4[%c0_3, %c0_4] : memref<4x4xf32, #tpu.memory_space<vmem>>, vector<4x1xf32>
    %c0_5 = arith.constant 0 : index
    %c1 = arith.constant 1 : index
    %4 = vector.load %arg4[%c0_5, %c1] : memref<4x4xf32, #tpu.memory_space<vmem>>, vector<4x1xf32>
    %cst_6 = arith.constant dense<0.000000e+00> : vector<4xf32>
    %5 = vector.multi_reduction <add>, %2, %cst_6 [1] : vector<4x512xf32> to vector<4xf32>
    %6 = vector.shape_cast %5 : vector<4xf32> to vector<4x1xf32>
    %7 = arith.mulf %2, %2 : vector<4x512xf32>
    %cst_7 = arith.constant dense<0.000000e+00> : vector<4xf32>
    %8 = vector.multi_reduction <add>, %7, %cst_7 [1] : vector<4x512xf32> to vector<4xf32>
    %9 = vector.shape_cast %8 : vector<4xf32> to vector<4x1xf32>
    %cst_8 = arith.constant 0.001953125 : f32
    %10 = vector.broadcast %cst_8 : f32 to vector<4x1xf32>
    %11 = arith.mulf %6, %10 : vector<4x1xf32>
    %cst_9 = arith.constant 0.001953125 : f32
    %12 = vector.broadcast %cst_9 : f32 to vector<4x1xf32>
    %13 = arith.mulf %9, %12 : vector<4x1xf32>
    %14 = arith.mulf %11, %11 : vector<4x1xf32>
    %15 = arith.subf %13, %14 : vector<4x1xf32>
    %cst_10 = arith.constant 0.000000e+00 : f32
    %16 = vector.broadcast %cst_10 : f32 to vector<4x1xf32>
    %17 = arith.maximumf %15, %16 : vector<4x1xf32>
    %cst_11 = arith.constant 9.99999974E-6 : f32
    %18 = vector.broadcast %cst_11 : f32 to vector<4x1xf32>
    %19 = arith.addf %17, %18 : vector<4x1xf32>
    %20 = math.rsqrt %19 : vector<4x1xf32>
    %21 = arith.mulf %3, %20 : vector<4x1xf32>
    %22 = arith.mulf %21, %11 : vector<4x1xf32>
    %23 = arith.subf %4, %22 : vector<4x1xf32>
    %24 = vector.broadcast %21 : vector<4x1xf32> to vector<4x512xf32>
    %25 = arith.mulf %24, %2 : vector<4x512xf32>
    %26 = vector.broadcast %23 : vector<4x1xf32> to vector<4x512xf32>
    %27 = arith.addf %25, %26 : vector<4x512xf32>
    %cst_12 = arith.constant 0.000000e+00 : f32
    %28 = vector.broadcast %cst_12 : f32 to vector<4x512xf32>
    %29 = arith.maximumf %27, %28 : vector<4x512xf32>
    %cst_13 = arith.constant 0.000000e+00 : f32
    %30 = vector.broadcast %cst_13 : f32 to vector<4x512xf32>
    %c73_i32 = arith.constant 73 : i32
    %31 = tpu.dynamic_rotate %29 by %c73_i32 dim 1 : vector<4x512xf32>, i32 -> vector<4x512xf32>
    %c0_14 = arith.constant 0 : index
    %c0_15 = arith.constant 0 : index
    %c0_16 = arith.constant 0 : index
    %32 = vector.load %arg3[%c0_14, %c0_15, %c0_16] : memref<27x4x512xf32, #tpu.memory_space<vmem>>, vector<1x4x512xf32>
    %33 = vector.shape_cast %32 : vector<1x4x512xf32> to vector<4x512xf32>
    %34 = arith.mulf %31, %33 : vector<4x512xf32>
    %35 = arith.addf %30, %34 : vector<4x512xf32>
    %c72_i32 = arith.constant 72 : i32
    %36 = tpu.dynamic_rotate %29 by %c72_i32 dim 1 : vector<4x512xf32>, i32 -> vector<4x512xf32>
    %c1_17 = arith.constant 1 : index
    %c0_18 = arith.constant 0 : index
    %c0_19 = arith.constant 0 : index
    %37 = vector.load %arg3[%c1_17, %c0_18, %c0_19] : memref<27x4x512xf32, #tpu.memory_space<vmem>>, vector<1x4x512xf32>
    %38 = vector.shape_cast %37 : vector<1x4x512xf32> to vector<4x512xf32>
    %39 = arith.mulf %36, %38 : vector<4x512xf32>
    %40 = arith.addf %35, %39 : vector<4x512xf32>
    %c71_i32 = arith.constant 71 : i32
    %41 = tpu.dynamic_rotate %29 by %c71_i32 dim 1 : vector<4x512xf32>, i32 -> vector<4x512xf32>
    %c2 = arith.constant 2 : index
    %c0_20 = arith.constant 0 : index
    %c0_21 = arith.constant 0 : index
    %42 = vector.load %arg3[%c2, %c0_20, %c0_21] : memref<27x4x512xf32, #tpu.memory_space<vmem>>, vector<1x4x512xf32>
    %43 = vector.shape_cast %42 : vector<1x4x512xf32> to vector<4x512xf32>
    %44 = arith.mulf %41, %43 : vector<4x512xf32>
    %45 = arith.addf %40, %44 : vector<4x512xf32>
    %c65_i32 = arith.constant 65 : i32
    %46 = tpu.dynamic_rotate %29 by %c65_i32 dim 1 : vector<4x512xf32>, i32 -> vector<4x512xf32>
    %c3 = arith.constant 3 : index
    %c0_22 = arith.constant 0 : index
    %c0_23 = arith.constant 0 : index
    %47 = vector.load %arg3[%c3, %c0_22, %c0_23] : memref<27x4x512xf32, #tpu.memory_space<vmem>>, vector<1x4x512xf32>
    %48 = vector.shape_cast %47 : vector<1x4x512xf32> to vector<4x512xf32>
    %49 = arith.mulf %46, %48 : vector<4x512xf32>
    %50 = arith.addf %45, %49 : vector<4x512xf32>
    %c64_i32 = arith.constant 64 : i32
    %51 = tpu.dynamic_rotate %29 by %c64_i32 dim 1 : vector<4x512xf32>, i32 -> vector<4x512xf32>
    %c4 = arith.constant 4 : index
    %c0_24 = arith.constant 0 : index
    %c0_25 = arith.constant 0 : index
    %52 = vector.load %arg3[%c4, %c0_24, %c0_25] : memref<27x4x512xf32, #tpu.memory_space<vmem>>, vector<1x4x512xf32>
    %53 = vector.shape_cast %52 : vector<1x4x512xf32> to vector<4x512xf32>
    %54 = arith.mulf %51, %53 : vector<4x512xf32>
    %55 = arith.addf %50, %54 : vector<4x512xf32>
    %c63_i32 = arith.constant 63 : i32
    %56 = tpu.dynamic_rotate %29 by %c63_i32 dim 1 : vector<4x512xf32>, i32 -> vector<4x512xf32>
    %c5 = arith.constant 5 : index
    %c0_26 = arith.constant 0 : index
    %c0_27 = arith.constant 0 : index
    %57 = vector.load %arg3[%c5, %c0_26, %c0_27] : memref<27x4x512xf32, #tpu.memory_space<vmem>>, vector<1x4x512xf32>
    %58 = vector.shape_cast %57 : vector<1x4x512xf32> to vector<4x512xf32>
    %59 = arith.mulf %56, %58 : vector<4x512xf32>
    %60 = arith.addf %55, %59 : vector<4x512xf32>
    %c57_i32 = arith.constant 57 : i32
    %61 = tpu.dynamic_rotate %29 by %c57_i32 dim 1 : vector<4x512xf32>, i32 -> vector<4x512xf32>
    %c6 = arith.constant 6 : index
    %c0_28 = arith.constant 0 : index
    %c0_29 = arith.constant 0 : index
    %62 = vector.load %arg3[%c6, %c0_28, %c0_29] : memref<27x4x512xf32, #tpu.memory_space<vmem>>, vector<1x4x512xf32>
    %63 = vector.shape_cast %62 : vector<1x4x512xf32> to vector<4x512xf32>
    %64 = arith.mulf %61, %63 : vector<4x512xf32>
    %65 = arith.addf %60, %64 : vector<4x512xf32>
    %c56_i32 = arith.constant 56 : i32
    %66 = tpu.dynamic_rotate %29 by %c56_i32 dim 1 : vector<4x512xf32>, i32 -> vector<4x512xf32>
    %c7 = arith.constant 7 : index
    %c0_30 = arith.constant 0 : index
    %c0_31 = arith.constant 0 : index
    %67 = vector.load %arg3[%c7, %c0_30, %c0_31] : memref<27x4x512xf32, #tpu.memory_space<vmem>>, vector<1x4x512xf32>
    %68 = vector.shape_cast %67 : vector<1x4x512xf32> to vector<4x512xf32>
    %69 = arith.mulf %66, %68 : vector<4x512xf32>
    %70 = arith.addf %65, %69 : vector<4x512xf32>
    %c55_i32 = arith.constant 55 : i32
    %71 = tpu.dynamic_rotate %29 by %c55_i32 dim 1 : vector<4x512xf32>, i32 -> vector<4x512xf32>
    %c8 = arith.constant 8 : index
    %c0_32 = arith.constant 0 : index
    %c0_33 = arith.constant 0 : index
    %72 = vector.load %arg3[%c8, %c0_32, %c0_33] : memref<27x4x512xf32, #tpu.memory_space<vmem>>, vector<1x4x512xf32>
    %73 = vector.shape_cast %72 : vector<1x4x512xf32> to vector<4x512xf32>
    %74 = arith.mulf %71, %73 : vector<4x512xf32>
    %75 = arith.addf %70, %74 : vector<4x512xf32>
    %c9_i32 = arith.constant 9 : i32
    %76 = tpu.dynamic_rotate %29 by %c9_i32 dim 1 : vector<4x512xf32>, i32 -> vector<4x512xf32>
    %c9 = arith.constant 9 : index
    %c0_34 = arith.constant 0 : index
    %c0_35 = arith.constant 0 : index
    %77 = vector.load %arg3[%c9, %c0_34, %c0_35] : memref<27x4x512xf32, #tpu.memory_space<vmem>>, vector<1x4x512xf32>
    %78 = vector.shape_cast %77 : vector<1x4x512xf32> to vector<4x512xf32>
    %79 = arith.mulf %76, %78 : vector<4x512xf32>
    %80 = arith.addf %75, %79 : vector<4x512xf32>
    %c8_i32 = arith.constant 8 : i32
    %81 = tpu.dynamic_rotate %29 by %c8_i32 dim 1 : vector<4x512xf32>, i32 -> vector<4x512xf32>
    %c10 = arith.constant 10 : index
    %c0_36 = arith.constant 0 : index
    %c0_37 = arith.constant 0 : index
    %82 = vector.load %arg3[%c10, %c0_36, %c0_37] : memref<27x4x512xf32, #tpu.memory_space<vmem>>, vector<1x4x512xf32>
    %83 = vector.shape_cast %82 : vector<1x4x512xf32> to vector<4x512xf32>
    %84 = arith.mulf %81, %83 : vector<4x512xf32>
    %85 = arith.addf %80, %84 : vector<4x512xf32>
    %c7_i32 = arith.constant 7 : i32
    %86 = tpu.dynamic_rotate %29 by %c7_i32 dim 1 : vector<4x512xf32>, i32 -> vector<4x512xf32>
    %c11 = arith.constant 11 : index
    %c0_38 = arith.constant 0 : index
    %c0_39 = arith.constant 0 : index
    %87 = vector.load %arg3[%c11, %c0_38, %c0_39] : memref<27x4x512xf32, #tpu.memory_space<vmem>>, vector<1x4x512xf32>
    %88 = vector.shape_cast %87 : vector<1x4x512xf32> to vector<4x512xf32>
    %89 = arith.mulf %86, %88 : vector<4x512xf32>
    %90 = arith.addf %85, %89 : vector<4x512xf32>
    %c1_i32 = arith.constant 1 : i32
    %91 = tpu.dynamic_rotate %29 by %c1_i32 dim 1 : vector<4x512xf32>, i32 -> vector<4x512xf32>
    %c12 = arith.constant 12 : index
    %c0_40 = arith.constant 0 : index
    %c0_41 = arith.constant 0 : index
    %92 = vector.load %arg3[%c12, %c0_40, %c0_41] : memref<27x4x512xf32, #tpu.memory_space<vmem>>, vector<1x4x512xf32>
    %93 = vector.shape_cast %92 : vector<1x4x512xf32> to vector<4x512xf32>
    %94 = arith.mulf %91, %93 : vector<4x512xf32>
    %95 = arith.addf %90, %94 : vector<4x512xf32>
    %c13 = arith.constant 13 : index
    %c0_42 = arith.constant 0 : index
    %c0_43 = arith.constant 0 : index
    %96 = vector.load %arg3[%c13, %c0_42, %c0_43] : memref<27x4x512xf32, #tpu.memory_space<vmem>>, vector<1x4x512xf32>
    %97 = vector.shape_cast %96 : vector<1x4x512xf32> to vector<4x512xf32>
    %98 = arith.mulf %29, %97 : vector<4x512xf32>
    %99 = arith.addf %95, %98 : vector<4x512xf32>
    %c511_i32 = arith.constant 511 : i32
    %100 = tpu.dynamic_rotate %29 by %c511_i32 dim 1 : vector<4x512xf32>, i32 -> vector<4x512xf32>
    %c14 = arith.constant 14 : index
    %c0_44 = arith.constant 0 : index
    %c0_45 = arith.constant 0 : index
    %101 = vector.load %arg3[%c14, %c0_44, %c0_45] : memref<27x4x512xf32, #tpu.memory_space<vmem>>, vector<1x4x512xf32>
    %102 = vector.shape_cast %101 : vector<1x4x512xf32> to vector<4x512xf32>
    %103 = arith.mulf %100, %102 : vector<4x512xf32>
    %104 = arith.addf %99, %103 : vector<4x512xf32>
    %c505_i32 = arith.constant 505 : i32
    %105 = tpu.dynamic_rotate %29 by %c505_i32 dim 1 : vector<4x512xf32>, i32 -> vector<4x512xf32>
    %c15 = arith.constant 15 : index
    %c0_46 = arith.constant 0 : index
    %c0_47 = arith.constant 0 : index
    %106 = vector.load %arg3[%c15, %c0_46, %c0_47] : memref<27x4x512xf32, #tpu.memory_space<vmem>>, vector<1x4x512xf32>
    %107 = vector.shape_cast %106 : vector<1x4x512xf32> to vector<4x512xf32>
    %108 = arith.mulf %105, %107 : vector<4x512xf32>
    %109 = arith.addf %104, %108 : vector<4x512xf32>
    %c504_i32 = arith.constant 504 : i32
    %110 = tpu.dynamic_rotate %29 by %c504_i32 dim 1 : vector<4x512xf32>, i32 -> vector<4x512xf32>
    %c16 = arith.constant 16 : index
    %c0_48 = arith.constant 0 : index
    %c0_49 = arith.constant 0 : index
    %111 = vector.load %arg3[%c16, %c0_48, %c0_49] : memref<27x4x512xf32, #tpu.memory_space<vmem>>, vector<1x4x512xf32>
    %112 = vector.shape_cast %111 : vector<1x4x512xf32> to vector<4x512xf32>
    %113 = arith.mulf %110, %112 : vector<4x512xf32>
    %114 = arith.addf %109, %113 : vector<4x512xf32>
    %c503_i32 = arith.constant 503 : i32
    %115 = tpu.dynamic_rotate %29 by %c503_i32 dim 1 : vector<4x512xf32>, i32 -> vector<4x512xf32>
    %c17 = arith.constant 17 : index
    %c0_50 = arith.constant 0 : index
    %c0_51 = arith.constant 0 : index
    %116 = vector.load %arg3[%c17, %c0_50, %c0_51] : memref<27x4x512xf32, #tpu.memory_space<vmem>>, vector<1x4x512xf32>
    %117 = vector.shape_cast %116 : vector<1x4x512xf32> to vector<4x512xf32>
    %118 = arith.mulf %115, %117 : vector<4x512xf32>
    %119 = arith.addf %114, %118 : vector<4x512xf32>
    %c457_i32 = arith.constant 457 : i32
    %120 = tpu.dynamic_rotate %29 by %c457_i32 dim 1 : vector<4x512xf32>, i32 -> vector<4x512xf32>
    %c18 = arith.constant 18 : index
    %c0_52 = arith.constant 0 : index
    %c0_53 = arith.constant 0 : index
    %121 = vector.load %arg3[%c18, %c0_52, %c0_53] : memref<27x4x512xf32, #tpu.memory_space<vmem>>, vector<1x4x512xf32>
    %122 = vector.shape_cast %121 : vector<1x4x512xf32> to vector<4x512xf32>
    %123 = arith.mulf %120, %122 : vector<4x512xf32>
    %124 = arith.addf %119, %123 : vector<4x512xf32>
    %c456_i32 = arith.constant 456 : i32
    %125 = tpu.dynamic_rotate %29 by %c456_i32 dim 1 : vector<4x512xf32>, i32 -> vector<4x512xf32>
    %c19 = arith.constant 19 : index
    %c0_54 = arith.constant 0 : index
    %c0_55 = arith.constant 0 : index
    %126 = vector.load %arg3[%c19, %c0_54, %c0_55] : memref<27x4x512xf32, #tpu.memory_space<vmem>>, vector<1x4x512xf32>
    %127 = vector.shape_cast %126 : vector<1x4x512xf32> to vector<4x512xf32>
    %128 = arith.mulf %125, %127 : vector<4x512xf32>
    %129 = arith.addf %124, %128 : vector<4x512xf32>
    %c455_i32 = arith.constant 455 : i32
    %130 = tpu.dynamic_rotate %29 by %c455_i32 dim 1 : vector<4x512xf32>, i32 -> vector<4x512xf32>
    %c20 = arith.constant 20 : index
    %c0_56 = arith.constant 0 : index
    %c0_57 = arith.constant 0 : index
    %131 = vector.load %arg3[%c20, %c0_56, %c0_57] : memref<27x4x512xf32, #tpu.memory_space<vmem>>, vector<1x4x512xf32>
    %132 = vector.shape_cast %131 : vector<1x4x512xf32> to vector<4x512xf32>
    %133 = arith.mulf %130, %132 : vector<4x512xf32>
    %134 = arith.addf %129, %133 : vector<4x512xf32>
    %c449_i32 = arith.constant 449 : i32
    %135 = tpu.dynamic_rotate %29 by %c449_i32 dim 1 : vector<4x512xf32>, i32 -> vector<4x512xf32>
    %c21 = arith.constant 21 : index
    %c0_58 = arith.constant 0 : index
    %c0_59 = arith.constant 0 : index
    %136 = vector.load %arg3[%c21, %c0_58, %c0_59] : memref<27x4x512xf32, #tpu.memory_space<vmem>>, vector<1x4x512xf32>
    %137 = vector.shape_cast %136 : vector<1x4x512xf32> to vector<4x512xf32>
    %138 = arith.mulf %135, %137 : vector<4x512xf32>
    %139 = arith.addf %134, %138 : vector<4x512xf32>
    %c448_i32 = arith.constant 448 : i32
    %140 = tpu.dynamic_rotate %29 by %c448_i32 dim 1 : vector<4x512xf32>, i32 -> vector<4x512xf32>
    %c22 = arith.constant 22 : index
    %c0_60 = arith.constant 0 : index
    %c0_61 = arith.constant 0 : index
    %141 = vector.load %arg3[%c22, %c0_60, %c0_61] : memref<27x4x512xf32, #tpu.memory_space<vmem>>, vector<1x4x512xf32>
    %142 = vector.shape_cast %141 : vector<1x4x512xf32> to vector<4x512xf32>
    %143 = arith.mulf %140, %142 : vector<4x512xf32>
    %144 = arith.addf %139, %143 : vector<4x512xf32>
    %c447_i32 = arith.constant 447 : i32
    %145 = tpu.dynamic_rotate %29 by %c447_i32 dim 1 : vector<4x512xf32>, i32 -> vector<4x512xf32>
    %c23 = arith.constant 23 : index
    %c0_62 = arith.constant 0 : index
    %c0_63 = arith.constant 0 : index
    %146 = vector.load %arg3[%c23, %c0_62, %c0_63] : memref<27x4x512xf32, #tpu.memory_space<vmem>>, vector<1x4x512xf32>
    %147 = vector.shape_cast %146 : vector<1x4x512xf32> to vector<4x512xf32>
    %148 = arith.mulf %145, %147 : vector<4x512xf32>
    %149 = arith.addf %144, %148 : vector<4x512xf32>
    %c441_i32 = arith.constant 441 : i32
    %150 = tpu.dynamic_rotate %29 by %c441_i32 dim 1 : vector<4x512xf32>, i32 -> vector<4x512xf32>
    %c24 = arith.constant 24 : index
    %c0_64 = arith.constant 0 : index
    %c0_65 = arith.constant 0 : index
    %151 = vector.load %arg3[%c24, %c0_64, %c0_65] : memref<27x4x512xf32, #tpu.memory_space<vmem>>, vector<1x4x512xf32>
    %152 = vector.shape_cast %151 : vector<1x4x512xf32> to vector<4x512xf32>
    %153 = arith.mulf %150, %152 : vector<4x512xf32>
    %154 = arith.addf %149, %153 : vector<4x512xf32>
    %c440_i32 = arith.constant 440 : i32
    %155 = tpu.dynamic_rotate %29 by %c440_i32 dim 1 : vector<4x512xf32>, i32 -> vector<4x512xf32>
    %c25 = arith.constant 25 : index
    %c0_66 = arith.constant 0 : index
    %c0_67 = arith.constant 0 : index
    %156 = vector.load %arg3[%c25, %c0_66, %c0_67] : memref<27x4x512xf32, #tpu.memory_space<vmem>>, vector<1x4x512xf32>
    %157 = vector.shape_cast %156 : vector<1x4x512xf32> to vector<4x512xf32>
    %158 = arith.mulf %155, %157 : vector<4x512xf32>
    %159 = arith.addf %154, %158 : vector<4x512xf32>
    %c439_i32 = arith.constant 439 : i32
    %160 = tpu.dynamic_rotate %29 by %c439_i32 dim 1 : vector<4x512xf32>, i32 -> vector<4x512xf32>
    %c26 = arith.constant 26 : index
    %c0_68 = arith.constant 0 : index
    %c0_69 = arith.constant 0 : index
    %161 = vector.load %arg3[%c26, %c0_68, %c0_69] : memref<27x4x512xf32, #tpu.memory_space<vmem>>, vector<1x4x512xf32>
    %162 = vector.shape_cast %161 : vector<1x4x512xf32> to vector<4x512xf32>
    %163 = arith.mulf %160, %162 : vector<4x512xf32>
    %164 = arith.addf %159, %163 : vector<4x512xf32>
    %c0_70 = arith.constant 0 : index
    %c2_71 = arith.constant 2 : index
    %165 = vector.load %arg4[%c0_70, %c2_71] : memref<4x4xf32, #tpu.memory_space<vmem>>, vector<4x1xf32>
    %c0_72 = arith.constant 0 : index
    %c3_73 = arith.constant 3 : index
    %166 = vector.load %arg4[%c0_72, %c3_73] : memref<4x4xf32, #tpu.memory_space<vmem>>, vector<4x1xf32>
    %cst_74 = arith.constant dense<0.000000e+00> : vector<4xf32>
    %167 = vector.multi_reduction <add>, %164, %cst_74 [1] : vector<4x512xf32> to vector<4xf32>
    %168 = vector.shape_cast %167 : vector<4xf32> to vector<4x1xf32>
    %169 = arith.mulf %164, %164 : vector<4x512xf32>
    %cst_75 = arith.constant dense<0.000000e+00> : vector<4xf32>
    %170 = vector.multi_reduction <add>, %169, %cst_75 [1] : vector<4x512xf32> to vector<4xf32>
    %171 = vector.shape_cast %170 : vector<4xf32> to vector<4x1xf32>
    %cst_76 = arith.constant 0.001953125 : f32
    %172 = vector.broadcast %cst_76 : f32 to vector<4x1xf32>
    %173 = arith.mulf %168, %172 : vector<4x1xf32>
    %cst_77 = arith.constant 0.001953125 : f32
    %174 = vector.broadcast %cst_77 : f32 to vector<4x1xf32>
    %175 = arith.mulf %171, %174 : vector<4x1xf32>
    %176 = arith.mulf %173, %173 : vector<4x1xf32>
    %177 = arith.subf %175, %176 : vector<4x1xf32>
    %cst_78 = arith.constant 0.000000e+00 : f32
    %178 = vector.broadcast %cst_78 : f32 to vector<4x1xf32>
    %179 = arith.maximumf %177, %178 : vector<4x1xf32>
    %cst_79 = arith.constant 9.99999974E-6 : f32
    %180 = vector.broadcast %cst_79 : f32 to vector<4x1xf32>
    %181 = arith.addf %179, %180 : vector<4x1xf32>
    %182 = math.rsqrt %181 : vector<4x1xf32>
    %183 = arith.mulf %165, %182 : vector<4x1xf32>
    %184 = arith.mulf %183, %173 : vector<4x1xf32>
    %185 = arith.subf %166, %184 : vector<4x1xf32>
    %186 = vector.broadcast %183 : vector<4x1xf32> to vector<4x512xf32>
    %187 = arith.mulf %186, %164 : vector<4x512xf32>
    %188 = vector.broadcast %185 : vector<4x1xf32> to vector<4x512xf32>
    %189 = arith.addf %187, %188 : vector<4x512xf32>
    %cst_80 = arith.constant 0.000000e+00 : f32
    %190 = vector.broadcast %cst_80 : f32 to vector<4x512xf32>
    %191 = arith.maximumf %189, %190 : vector<4x512xf32>
    %c0_81 = arith.constant 0 : index
    %c0_82 = arith.constant 0 : index
    %192 = vector.load %arg2[%c0_81, %c0_82] : memref<64x4xf32, #tpu.memory_space<vmem>>, vector<64x4xf32>
    %cst_83 = arith.constant dense<0.000000e+00> : vector<64x512xf32>
    %193 = tpu.matmul %192, %191, %cst_83 {dimension_numbers = #tpu.dot_dimension_numbers<[1], [0], [0], [1], [0, 0, 1, 1], [], []>} : vector<64x4xf32>, vector<4x512xf32>, vector<64x512xf32> -> vector<64x512xf32>
    %c0_84 = arith.constant 0 : index
    %c0_85 = arith.constant 0 : index
    %194 = vector.load %arg6[%c0_84, %c0_85] : memref<64x512xf32, #tpu.memory_space<vmem>>, vector<64x512xf32>
    tpu.vector_store %arg6[%c0_84, %c0_85], %193 {strides = array<i32>} : memref<64x512xf32, #tpu.memory_space<vmem>>, vector<64x512xf32>,
    %c0_86 = arith.constant 0 : index
    %c0_87 = arith.constant 0 : index
    %195 = vector.load %arg5[%c0_86, %c0_87] : memref<64x2xf32, #tpu.memory_space<vmem>>, vector<64x1xf32>
    %c0_88 = arith.constant 0 : index
    %c1_89 = arith.constant 1 : index
    %196 = vector.load %arg5[%c0_88, %c1_89] : memref<64x2xf32, #tpu.memory_space<vmem>>, vector<64x1xf32>
    %cst_90 = arith.constant dense<0.000000e+00> : vector<64xf32>
    %197 = vector.multi_reduction <add>, %193, %cst_90 [1] : vector<64x512xf32> to vector<64xf32>
    %198 = vector.shape_cast %197 : vector<64xf32> to vector<64x1xf32>
    %199 = arith.mulf %193, %193 : vector<64x512xf32>
    %cst_91 = arith.constant dense<0.000000e+00> : vector<64xf32>
    %200 = vector.multi_reduction <add>, %199, %cst_91 [1] : vector<64x512xf32> to vector<64xf32>
    %201 = vector.shape_cast %200 : vector<64xf32> to vector<64x1xf32>
    %cst_92 = arith.constant 0.001953125 : f32
    %202 = vector.broadcast %cst_92 : f32 to vector<64x1xf32>
    %203 = arith.mulf %198, %202 : vector<64x1xf32>
    %cst_93 = arith.constant 0.001953125 : f32
    %204 = vector.broadcast %cst_93 : f32 to vector<64x1xf32>
    %205 = arith.mulf %201, %204 : vector<64x1xf32>
    %206 = arith.mulf %203, %203 : vector<64x1xf32>
    %207 = arith.subf %205, %206 : vector<64x1xf32>
    %cst_94 = arith.constant 0.000000e+00 : f32
    %208 = vector.broadcast %cst_94 : f32 to vector<64x1xf32>
    %209 = arith.maximumf %207, %208 : vector<64x1xf32>
    %cst_95 = arith.constant 9.99999974E-6 : f32
    %210 = vector.broadcast %cst_95 : f32 to vector<64x1xf32>
    %211 = arith.addf %209, %210 : vector<64x1xf32>
    %212 = math.rsqrt %211 : vector<64x1xf32>
    %213 = arith.mulf %195, %212 : vector<64x1xf32>
    %214 = arith.mulf %213, %203 : vector<64x1xf32>
    %215 = arith.subf %196, %214 : vector<64x1xf32>
    %c0_96 = arith.constant 0 : index
    %c0_97 = arith.constant 0 : index
    %216 = vector.load %arg6[%c0_96, %c0_97] : memref<64x512xf32, #tpu.memory_space<vmem>>, vector<64x512xf32>
    %217 = vector.broadcast %213 : vector<64x1xf32> to vector<64x512xf32>
    %218 = arith.mulf %217, %216 : vector<64x512xf32>
    %219 = vector.broadcast %215 : vector<64x1xf32> to vector<64x512xf32>
    %220 = arith.addf %218, %219 : vector<64x512xf32>
    %c0_98 = arith.constant 0 : index
    %c0_99 = arith.constant 0 : index
    %221 = vector.load %arg0[%c0_98, %c0_99] : memref<64x512xf32, #tpu.memory_space<vmem>>, vector<64x512xf32>
    %222 = arith.addf %220, %221 : vector<64x512xf32>
    %cst_100 = arith.constant 0.000000e+00 : f32
    %223 = vector.broadcast %cst_100 : f32 to vector<64x512xf32>
    %224 = arith.maximumf %222, %223 : vector<64x512xf32>
    %c0_101 = arith.constant 0 : index
    %c0_102 = arith.constant 0 : index
    %225 = vector.load %arg6[%c0_101, %c0_102] : memref<64x512xf32, #tpu.memory_space<vmem>>, vector<64x512xf32>
    tpu.vector_store %arg6[%c0_101, %c0_102], %224 {strides = array<i32>} : memref<64x512xf32, #tpu.memory_space<vmem>>, vector<64x512xf32>,
    return
  }
}

</mosaic_0001>

<bundles_post_ra>
// kernel: resnext_bottleneck_forward.1
= control target key start
LH: loop header
LB: loop body
LE: loop exit
PB: predicated region body
PF: predicated region fallthrough
CT: control target
= control target key end

     0   :  { %v3774_v3 = vmov 0.0   ;;  %vm56_vm0 = vcmask 523264   ;;  %vm203_vm1 = vcmask 1043456   ;;  %s2058_s16 = smov 1   ;;  %s2059_s17 = smov 71   ;;  %s3765_s0 = inlined_call_operand.vmem [shape: f32[64,512], index: 0, kind: input, shape index: {}]   ;;  %s3766_s1 = inlined_call_operand.vmem [shape: f32[4,64], index: 1, kind: input, shape index: {}]   ;;  %s3767_s4 = inlined_call_operand.vmem [shape: f32[4,4], index: 4, kind: input, shape index: {}]   ;;  %s3768_s3 = inlined_call_operand.vmem [shape: f32[27,4,512], index: 3, kind: input, shape index: {}]   ;;  %s3769_s2 = inlined_call_operand.vmem [shape: f32[64,4], index: 2, kind: input, shape index: {}]   ;;  %s3770_s5 = inlined_call_operand.vmem [shape: f32[64,2], index: 5, kind: input, shape index: {}]   ;;  %s3771_s6 = inlined_call_operand.vmem [shape: f32[64,512], index: 6, kind: output, shape index: {}]  }
   0x1   :  { %v25_v0 = vld [vmem:[%s3765_s0 + $0x8] sm:$0xff]  ;;  %v24_v2 = vld [vmem:[%s3765_s0] sm:$0xff]  ;;  %124 = vmatprep.mubr.f32.mxu0 %v3774_v3  ;;  %195 = vmatprep.mubr.f32.mxu1 %v3774_v3  ;;  %v27_v6 = vld [vmem:[%s3765_s0 + $0x18] sm:$0xff]  ;;  %s2060_s18 = smov 73   ;;  %s2061_s19 = smov 65  }
   0x2   :  { %v29_v1 = vld [vmem:[%s3765_s0 + $0x28] sm:$0xff]  ;;  %v28_v5 = vld [vmem:[%s3765_s0 + $0x20] sm:$0xff]  ;;  %v31_v7 = vld [vmem:[%s3765_s0 + $0x38] sm:$0xff]  ;;  %s2062_s20 = smov 64   ;;  %s2063_s21 = smov 72  }
   0x3   :  { %v1919_v4 = vpack.c.bf16 %v29_v1, %v25_v0  ;;  %v1921_v8 = vpack.c.bf16 %v28_v5, %v24_v2  ;;  %v1935_v9 = vpack.c.bf16 %v31_v7, %v27_v6  ;;  %v26_v10 = vld [vmem:[%s3765_s0 + $0x10] sm:$0xff]  ;;  %v33_v12 = vld [vmem:[%s3765_s0 + $0x48] sm:$0xff]  ;;  %v32_v15 = vld [vmem:[%s3765_s0 + $0x40] sm:$0xff]  ;;  %s2064_s22 = smov 63   ;;  %s2065_s23 = smov 57  }
   0x4   :  { %v30_v11 = vld [vmem:[%s3765_s0 + $0x30] sm:$0xff]  ;;  %v37_v14 = vld [vmem:[%s3765_s0 + $0x68] sm:$0xff]  ;;  %v36_v16 = vld [vmem:[%s3765_s0 + $0x60] sm:$0xff]  ;;  %s2066_s24 = smov 56   ;;  %s2067_s25 = smov 55  }
   0x5   :  { %1920 = vmatprep.subr.bf16.mxu0 %v1919_v4  ;;  %v1937_v13 = vpack.c.bf16 %v30_v11, %v26_v10  ;;  %1936 = vmatprep.subr.bf16.mxu1 %v1935_v9  ;;  %v1923_v17 = vpack.c.bf16 %v37_v14, %v33_v12  ;;  %v1925_v18 = vpack.c.bf16 %v36_v16, %v32_v15  ;;  %v35_v19 = vld [vmem:[%s3765_s0 + $0x58] sm:$0xff]  ;;  %v34_v21 = vld [vmem:[%s3765_s0 + $0x50] sm:$0xff]  ;;  %v41_v24 = vld [vmem:[%s3765_s0 + $0x88] sm:$0xff]  ;;  %v3776_v9 = vmov 0   ;;  %s2068_s26 = smov 9   ;;  %s2069_s27 = smov 8  }
   0x6   :  { %1922 = vmatpush1.bf16.msra.mxu0 %v1921_v8  ;;  %v39_v20 = vld [vmem:[%s3765_s0 + $0x78] sm:$0xff]  ;;  %v38_v23 = vld [vmem:[%s3765_s0 + $0x70] sm:$0xff]  ;;  %v45_v25 = vld [vmem:[%s3765_s0 + $0xa8] sm:$0xff]  ;;  %1973 = vset.pattern.permute.xlu1 %v3776_v9  ;;  %s2070_s28 = smov 7   ;;  %s2071_s29 = smov 127  }
   0x7   :  { %1938 = vmatpush1.bf16.msra.mxu1 %v1937_v13  ;;  %v1939_v22 = vpack.c.bf16 %v39_v20, %v35_v19  ;;  %1924 = vmatprep.subr.bf16.mxu0 %v1923_v17  ;;  %v1941_v26 = vpack.c.bf16 %v38_v23, %v34_v21  ;;  %v1927_v27 = vpack.c.bf16 %v45_v25, %v41_v24  ;;  %v40_v28 = vld [vmem:[%s3765_s0 + $0x80] sm:$0xff]  ;;  %v43_v30 = vld [vmem:[%s3765_s0 + $0x98] sm:$0xff]  ;;  %v42_v32 = vld [vmem:[%s3765_s0 + $0x90] sm:$0xff]  ;;  %s2072_s30 = smov 121   ;;  %s2073_s7 = smov 120  }
   0x8   :  { %v44_v29 = vld [vmem:[%s3765_s0 + $0xa0] sm:$0xff]  ;;  %v47_v31 = vld [vmem:[%s3765_s0 + $0xb8] sm:$0xff]  ;;  %v46_v33 = vld [vmem:[%s3765_s0 + $0xb0] sm:$0xff]  ;;  %s2074_s8 = smov 119  }
   0x9   :  { %1940 = vmatprep.subr.bf16.mxu1 %v1939_v22  ;;  %v1929_v34 = vpack.c.bf16 %v44_v29, %v40_v28  ;;  %v1943_v35 = vpack.c.bf16 %v47_v31, %v43_v30  ;;  %v49_v36 = vld [vmem:[%s3765_s0 + $0xc8] sm:$0xff]  ;;  %v48_v38 = vld [vmem:[%s3765_s0 + $0xc0] sm:$0xff]  ;;  %v1945_v39 = vpack.c.bf16 %v46_v33, %v42_v32  ;;  %v51_v42 = vld [vmem:[%s3765_s0 + $0xd8] sm:$0xff] }
   0xa   :  { %1926 = vmatpush1.bf16.msra.mxu0 %v1925_v18  ;;  %v53_v37 = vld [vmem:[%s3765_s0 + $0xe8] sm:$0xff]  ;;  %v52_v41 = vld [vmem:[%s3765_s0 + $0xe0] sm:$0xff]  ;;  %v55_v43 = vld [vmem:[%s3765_s0 + $0xf8] sm:$0xff]  ;;  %v3772_v18 = vmov 1  }
   0xb   :  { %1942 = vmatpush1.bf16.msra.mxu1 %v1941_v26  ;;  %1928 = vmatprep.subr.bf16.mxu0 %v1927_v27  ;;  %v1931_v40 = vpack.c.bf16 %v53_v37, %v49_v36  ;;  %v1947_v44 = vpack.c.bf16 %v55_v43, %v51_v42  ;;  %v50_v45 = vld [vmem:[%s3765_s0 + $0xd0] sm:$0xff]  ;;  %v1933_v47 = vpack.c.bf16 %v52_v41, %v48_v38  ;;  %v23_v49 = vld [vmem:[%s3766_s1] sm:$0xf]  ;;  %v270_v41 = vlaneseq }
   0xc   :  { %1944 = vmatprep.subr.bf16.mxu1 %v1943_v35  ;;  %v54_v46 = vld [vmem:[%s3765_s0 + $0xf0] sm:$0xff]  ;;  %1974 = vset.pattern.permute.xlu0 %v3772_v18  ;;  %v202_v19 = vld [vmem:[%s3767_s4] sm:$0xf] }
   0xd   :  { %v1949_v48 = vpack.c.bf16 %v54_v46, %v50_v45  ;;  %v2326_v43 = vand.u32 127, %v270_v41 }
   0xe   :  { %1930 = vmatpush1.bf16.msra.mxu0 %v1929_v34 }
   0xf   :  { %1946 = vmatpush1.bf16.msra.mxu1 %v1945_v39  ;;  %1932 = vmatprep.subr.bf16.mxu0 %v1931_v40  ;;  %vm361_vm2 = vcmp.lt.s32.totalorder %v2326_v43, 65  ;;  %vm391_vm3 = vcmp.lt.s32.totalorder %v2326_v43, 64  ;;  %vm421_vm4 = vcmp.lt.s32.totalorder %v2326_v43, 63  ;;  %vm301_vm5 = vcmp.lt.s32.totalorder %v2326_v43, 72 }
  0x10   :  { %1948 = vmatprep.subr.bf16.mxu1 %v1947_v44  ;;  %vm272_vm6 = vcmp.lt.s32.totalorder %v2326_v43, 73  ;;  %vm331_vm7 = vcmp.lt.s32.totalorder %v2326_v43, 71  ;;  %vm451_vm8 = vcmp.lt.s32.totalorder %v2326_v43, 57  ;;  %vm481_vm9 = vcmp.lt.s32.totalorder %v2326_v43, 56 }
  0x11   :  { %vm511_vm10 = vcmp.lt.s32.totalorder %v2326_v43, 55  ;;  %vm541_vm11 = vcmp.lt.s32.totalorder %v2326_v43, 9  ;;  %vm571_vm12 = vcmp.lt.s32.totalorder %v2326_v43, 8  ;;  %vm601_vm13 = vcmp.lt.s32.totalorder %v2326_v43, 7 }
  0x12   :  { %1934 = vmatpush1.bf16.msra.mxu0 %v1933_v47  ;;  %vm631_vm14 = vcmp.lt.s32.totalorder %v2326_v43, 1  ;;  %vm678_vm15 = vcmp.lt.s32.totalorder %v2326_v43, 127 }
  0x13   :  { %1950 = vmatpush1.bf16.msra.mxu1 %v1949_v48 }
  0x15   :  { %1845 = vmatmul.mubr.msk.f32.vlgmr.msra.gmra.mrb[0].mxu0 %vm56_vm0, %v23_v49 }
  0x16   :  { %1846 = vmatmul.mubr.msk.f32.vlgmr.msra.gmra.mrb[0].mxu1 %vm56_vm0, %v23_v49  ;;  %1111 = vmatprep.mubr.f32.mxu0 %v3774_v3  ;;  %vm708_vm0 = vcmp.lt.s32.totalorder %v2326_v43, 121 }
  0x17   :  { %1224 = vmatprep.mubr.f32.mxu1 %v3774_v3 }
  0xe8   :  { %v126_v50 = vpop.f32.mrb[0].mxu0 }
  0xe9   :  { %v204_v51 = vsel %vm203_vm1, %v126_v50, 0.0  ;;  %v213_v52 = vmul.f32 %v126_v50, %v126_v50  ;;  %v128_v53 = vpop.f32.mrb[1].mxu0  ;;  %v197_v54 = vpop.f32.mrb[0].mxu1 }
  0xea   :  { %v205_v55 = vsel %vm203_vm1, %v128_v53, 0.0  ;;  %v214_v56 = vmul.f32 %v128_v53, %v128_v53  ;;  %v215_v57 = vmul.f32 %v197_v54, %v197_v54  ;;  %v199_v58 = vpop.f32.mrb[1].mxu1  ;;  %v207_v59 = vsel %vm203_vm1, %v197_v54, 0.0 }
  0xeb   :  { %v217_v60 = vsel %vm203_vm1, %v213_v52, 0.0  ;;  %v206_v61 = vadd.f32 %v205_v55, %v204_v51  ;;  %v216_v63 = vmul.f32 %v199_v58, %v199_v58  ;;  %v209_v4 = vsel %vm203_vm1, %v199_v58, 0.0 }
  0xec   :  { %v218_v62 = vsel %vm203_vm1, %v214_v56, 0.0  ;;  %v220_v0 = vsel %vm203_vm1, %v215_v57, 0.0 }
  0xed   :  { %v208_v1 = vadd.f32 %v207_v59, %v206_v61  ;;  %v219_v2 = vadd.f32 %v218_v62, %v217_v60  ;;  %v222_v7 = vsel %vm203_vm1, %v216_v63, 0.0 }
  0xef   :  { %v210_v5 = vadd.f32 %v209_v4, %v208_v1  ;;  %v221_v6 = vadd.f32 %v220_v0, %v219_v2  ;;  %v1848_v0 = vld [vmem:[%s3768_s3 + $0x18] sm:$0xff]  ;;  %v278_v2 = vld [vmem:[%s3768_s3 + $0x8] sm:$0xff] }
  0xf0   :  { %v1850_v4 = vld [vmem:[%s3768_s3 + $0x28] sm:$0xff] }
  0xf1   :  { %211 = vadd.xlane.f32.xlu0 %v210_v5  ;;  %v223_v8 = vadd.f32 %v222_v7, %v221_v6 }
  0xf5   :  { %224 = vadd.xlane.f32.xlu0 %v223_v8  ;;  %v1852_v8 = vld [vmem:[%s3768_s3 + $0x38] sm:$0xff] }
 0x17e   :  { %v212_v10 = vpop.xlane.xlu0 %211 }
 0x17f   :  { %v226_v11 = vmul.f32 0.001953125, %v212_v10 }
 0x181   :  { %v228_v13 = vmul.f32 %v226_v11, %v226_v11 }
 0x182   :  { %v225_v12 = vpop.xlane.xlu0 %224 }
 0x183   :  { %v227_v14 = vmul.f32 0.001953125, %v225_v12 }
 0x185   :  { %v229_v15 = vsub.f32 %v227_v14, %v228_v13  ;;  %v2431_v13 = vld [vmem:[%s3768_s3 + $0x48] sm:$0xff]  ;;  %v1847_v14 = vld [vmem:[%s3768_s3 + $0x10] sm:$0xff] }
 0x187   :  { %v230_v16 = vmax.f32 %v229_v15, 0.0 }
 0x189   :  { %v231_v17 = vadd.f32 1e-05, %v230_v16 }
 0x18b   :  { %2035 = vrsqrt.f32 %v231_v17 }
 0x195   :  { %v2036_v20 = vpop.eup %2035 }
 0x196   :  { %v233_v21 = vmul.f32 %v2036_v20, %v202_v19  ;;  %v277_v20 = vld [vmem:[%s3768_s3] sm:$0xff] }
 0x198   :  { %v234_v22 = vmul.f32 %v233_v21, %v226_v11 }
 0x19a   :  { %236 = vrot.lane.b32.xlu1 %v234_v22, %s2058_s16  ;;  %v1849_v22 = vld [vmem:[%s3768_s3 + $0x20] sm:$0xff] }
 0x19e   :  { %242 = vperm.xlu1 %1973, %v233_v21   ;;  %v2445_v21 = vld [vmem:[%s3768_s3 + $0x58] sm:$0xff] }
 0x20c   :  { %v237_v23 = vpop.permute.xlu1 %236 }
 0x20d   :  { %v239_v24 = vsub.f32 %v202_v19, %v237_v23 }
 0x20f   :  { %251 = vperm.xlu0 %1974, %v239_v24   ;;  %v311_v24 = vcombine.high %v1847_v14, %v1847_v14 }
 0x213   :  { %1977 = vset.pattern.permute.xlu0 %v3776_v9  ;;  %v2644_v9 = vld [vmem:[%s3768_s3 + $0x160] sm:$0xff] }
 0x214   :  { %3857 = vst [vmem:[#allocation28_spill] sm:$0xff] %v2644_v9 }
 0x21d   :  { %v243_v25 = vpop.permute.xlu1 %242 }
 0x21e   :  { %v245_v26 = vmul.f32 %v243_v25, %v126_v50  ;;  %v247_v27 = vmul.f32 %v243_v25, %v197_v54  ;;  %v246_v29 = vmul.f32 %v243_v25, %v128_v53  ;;  %v248_v35 = vmul.f32 %v243_v25, %v199_v58 }
 0x28e   :  { %v252_v28 = vpop.permute.xlu0 %251 }
 0x28f   :  { %v254_v30 = vadd.f32 %v252_v28, %v245_v26  ;;  %v256_v31 = vadd.f32 %v252_v28, %v247_v27  ;;  %v255_v32 = vadd.f32 %v252_v28, %v246_v29  ;;  %v257_v36 = vadd.f32 %v252_v28, %v248_v35  ;;  %v1851_v27 = vld [vmem:[%s3768_s3 + $0x30] sm:$0xff] }
 0x290   :  { %v281_v28 = vcombine.high %v277_v20, %v277_v20 }
 0x291   :  { %v2230_v33 = vmax.f32 %v254_v30, 0.0  ;;  %v2232_v34 = vmax.f32 %v256_v31, 0.0  ;;  %v2237_v37 = vmax.f32 %v255_v32, 0.0  ;;  %v2242_v38 = vmax.f32 %v257_v36, 0.0 }
 0x292   :  { %v341_v30 = vcombine.high %v1849_v22, %v1849_v22 }
 0x293   :  { %327 = vrot.lane.b32.xlu0 %v2232_v34, %s2059_s17  ;;  %262 = vrot.lane.b32.xlu1 %v2230_v33, %s2060_s18 }
 0x297   :  { %355 = vrot.lane.b32.xlu0 %v2237_v37, %s2061_s19  ;;  %264 = vrot.lane.b32.xlu1 %v2237_v37, %s2060_s18 }
 0x29b   :  { %357 = vrot.lane.b32.xlu0 %v2232_v34, %s2061_s19  ;;  %268 = vrot.lane.b32.xlu1 %v2242_v38, %s2060_s18 }
 0x29f   :  { %385 = vrot.lane.b32.xlu0 %v2237_v37, %s2062_s20  ;;  %293 = vrot.lane.b32.xlu1 %v2230_v33, %s2063_s21 }
 0x2a3   :  { %387 = vrot.lane.b32.xlu0 %v2232_v34, %s2062_s20  ;;  %295 = vrot.lane.b32.xlu1 %v2237_v37, %s2063_s21 }
 0x2a7   :  { %415 = vrot.lane.b32.xlu0 %v2237_v37, %s2064_s22  ;;  %299 = vrot.lane.b32.xlu1 %v2242_v38, %s2063_s21 }
 0x2ab   :  { %417 = vrot.lane.b32.xlu0 %v2232_v34, %s2064_s22  ;;  %266 = vrot.lane.b32.xlu1 %v2232_v34, %s2060_s18 }
 0x2af   :  { %445 = vrot.lane.b32.xlu0 %v2237_v37, %s2065_s23  ;;  %297 = vrot.lane.b32.xlu1 %v2232_v34, %s2063_s21 }
 0x2b3   :  { %447 = vrot.lane.b32.xlu0 %v2232_v34, %s2065_s23  ;;  %323 = vrot.lane.b32.xlu1 %v2230_v33, %s2059_s17 }
 0x2b7   :  { %475 = vrot.lane.b32.xlu0 %v2237_v37, %s2066_s24  ;;  %325 = vrot.lane.b32.xlu1 %v2237_v37, %s2059_s17 }
 0x2bb   :  { %477 = vrot.lane.b32.xlu0 %v2232_v34, %s2066_s24  ;;  %329 = vrot.lane.b32.xlu1 %v2242_v38, %s2059_s17 }
 0x2bf   :  { %505 = vrot.lane.b32.xlu0 %v2237_v37, %s2067_s25  ;;  %353 = vrot.lane.b32.xlu1 %v2230_v33, %s2061_s19 }
 0x2c3   :  { %507 = vrot.lane.b32.xlu0 %v2232_v34, %s2067_s25  ;;  %359 = vrot.lane.b32.xlu1 %v2242_v38, %s2061_s19 }
 0x2c7   :  { %535 = vrot.lane.b32.xlu0 %v2237_v37, %s2068_s26  ;;  %383 = vrot.lane.b32.xlu1 %v2230_v33, %s2062_s20 }
 0x2cb   :  { %537 = vrot.lane.b32.xlu0 %v2232_v34, %s2068_s26  ;;  %389 = vrot.lane.b32.xlu1 %v2242_v38, %s2062_s20 }
 0x2cf   :  { %565 = vrot.lane.b32.xlu0 %v2237_v37, %s2069_s27  ;;  %413 = vrot.lane.b32.xlu1 %v2230_v33, %s2064_s22 }
 0x2d3   :  { %567 = vrot.lane.b32.xlu0 %v2232_v34, %s2069_s27  ;;  %419 = vrot.lane.b32.xlu1 %v2242_v38, %s2064_s22 }
 0x2d7   :  { %595 = vrot.lane.b32.xlu0 %v2237_v37, %s2070_s28  ;;  %443 = vrot.lane.b32.xlu1 %v2230_v33, %s2065_s23 }
 0x2db   :  { %597 = vrot.lane.b32.xlu0 %v2232_v34, %s2070_s28  ;;  %449 = vrot.lane.b32.xlu1 %v2242_v38, %s2065_s23 }
 0x2df   :  { %625 = vrot.lane.b32.xlu0 %v2237_v37, %s2058_s16  ;;  %473 = vrot.lane.b32.xlu1 %v2230_v33, %s2066_s24 }
 0x2e3   :  { %627 = vrot.lane.b32.xlu0 %v2232_v34, %s2058_s16  ;;  %479 = vrot.lane.b32.xlu1 %v2242_v38, %s2066_s24 }
 0x2e7   :  { %672 = vrot.lane.b32.xlu0 %v2237_v37, %s2071_s29  ;;  %503 = vrot.lane.b32.xlu1 %v2230_v33, %s2067_s25 }
 0x2eb   :  { %676 = vrot.lane.b32.xlu0 %v2242_v38, %s2071_s29  ;;  %509 = vrot.lane.b32.xlu1 %v2242_v38, %s2067_s25 }
 0x2ef   :  { %702 = vrot.lane.b32.xlu0 %v2237_v37, %s2072_s30  ;;  %533 = vrot.lane.b32.xlu1 %v2230_v33, %s2068_s26 }
 0x2f3   :  { %706 = vrot.lane.b32.xlu0 %v2242_v38, %s2072_s30  ;;  %539 = vrot.lane.b32.xlu1 %v2242_v38, %s2068_s26 }
 0x2f7   :  { %732 = vrot.lane.b32.xlu0 %v2237_v37, %s2073_s7  ;;  %563 = vrot.lane.b32.xlu1 %v2230_v33, %s2069_s27 }
 0x2fb   :  { %736 = vrot.lane.b32.xlu0 %v2242_v38, %s2073_s7  ;;  %569 = vrot.lane.b32.xlu1 %v2242_v38, %s2069_s27 }
 0x2ff   :  { %762 = vrot.lane.b32.xlu0 %v2237_v37, %s2074_s8  ;;  %593 = vrot.lane.b32.xlu1 %v2230_v33, %s2070_s28 }
 0x303   :  { %766 = vrot.lane.b32.xlu0 %v2242_v38, %s2074_s8  ;;  %599 = vrot.lane.b32.xlu1 %v2242_v38, %s2070_s28 }
 0x305   :  { %v2318_v39 = vpop.permute.xlu0 %327  ;;  %v2320_v40 = vpop.permute.xlu1 %262 }
 0x307   :  { %623 = vrot.lane.b32.xlu1 %v2230_v33, %s2058_s16 }
 0x309   :  { %v2324_v42 = vpop.permute.xlu0 %355  ;;  %v2328_v44 = vpop.permute.xlu1 %264 }
 0x30a   :  { %v2466_v35 = vsel %vm272_vm6, %v2320_v40, %v2328_v44 }
 0x30b   :  { %629 = vrot.lane.b32.xlu1 %v2242_v38, %s2058_s16  ;;  %3838 = vst [vmem:[#allocation9_spill] sm:$0xff] %v2466_v35 }
 0x30d   :  { %v2333_v45 = vpop.permute.xlu0 %357  ;;  %v2335_v46 = vpop.permute.xlu1 %268 }
 0x30e   :  { %v2341_v47 = vsel %vm361_vm2, %v2324_v42, %v2333_v45 }
 0x30f   :  { %3831 = vst [vmem:[#allocation2_spill] sm:$0xff] %v2341_v47  ;;  %670 = vrot.lane.b32.xlu1 %v2230_v33, %s2071_s29  ;;  %v377_v15 = vmul.f32 %v1852_v8, %v2341_v47  ;;  %v2681_v47 = vld [vmem:[%s3768_s3 + $0x180] sm:$0xff] }
 0x310   :  { %3862 = vst [vmem:[#allocation33_spill] sm:$0xff] %v2681_v47 }
 0x311   :  { %v2345_v48 = vpop.permute.xlu0 %385  ;;  %v2347_v49 = vpop.permute.xlu1 %293 }
 0x313   :  { %674 = vrot.lane.b32.xlu1 %v2232_v34, %s2071_s29 }
 0x315   :  { %v2352_v50 = vpop.permute.xlu0 %387  ;;  %v296_v51 = vpop.permute.xlu1 %295 }
 0x316   :  { %v2358_v52 = vsel %vm391_vm3, %v2345_v48, %v2352_v50  ;;  %v2455_v26 = vsel %vm301_vm5, %v2347_v49, %v296_v51 }
 0x317   :  { %3832 = vst [vmem:[#allocation3_spill] sm:$0xff] %v2358_v52  ;;  %700 = vrot.lane.b32.xlu1 %v2230_v33, %s2072_s30  ;;  %v407_v23 = vmul.f32 %v2431_v13, %v2358_v52  ;;  %3837 = vst [vmem:[#allocation8_spill] sm:$0xff] %v2455_v26  ;;  %v316_v41 = vmul.f32 %v311_v24, %v2455_v26  ;;  %v2658_v52 = vld [vmem:[%s3768_s3 + $0x170] sm:$0xff]  ;;  %v2836_v26 = vld [vmem:[%s3768_s3 + $0xc0] sm:$0xff] }
 0x318   :  { %3859 = vst [vmem:[#allocation30_spill] sm:$0xff] %v2658_v52  ;;  %v2769_v52 = vld [vmem:[%s3768_s3 + $0x80] sm:$0xff] }
 0x319   :  { %v2362_v53 = vpop.permute.xlu0 %415  ;;  %v2364_v54 = vpop.permute.xlu1 %299 }
 0x31b   :  { %704 = vrot.lane.b32.xlu1 %v2232_v34, %s2072_s30 }
 0x31d   :  { %v2369_v55 = vpop.permute.xlu0 %417  ;;  %v2371_v56 = vpop.permute.xlu1 %266 }
 0x31e   :  { %v2377_v57 = vsel %vm421_vm4, %v2362_v53, %v2369_v55  ;;  %v2399_v63 = vsel %vm272_vm6, %v2328_v44, %v2371_v56 }
 0x31f   :  { %3833 = vst [vmem:[#allocation4_spill] sm:$0xff] %v2377_v57  ;;  %730 = vrot.lane.b32.xlu1 %v2230_v33, %s2073_s7  ;;  %3835 = vst [vmem:[#allocation6_spill] sm:$0xff] %v2399_v63  ;;  %v287_v5 = vmul.f32 %v278_v2, %v2399_v63  ;;  %v437_v29 = vmul.f32 %v2445_v21, %v2377_v57 }
 0x321   :  { %v2381_v58 = vpop.permute.xlu0 %445  ;;  %v298_v59 = vpop.permute.xlu1 %297 }
 0x322   :  { %v2388_v60 = vsel %vm301_vm5, %v296_v51, %v298_v59  ;;  %v312_v51 = vcombine.high %v1848_v0, %v1848_v0 }
 0x323   :  { %734 = vrot.lane.b32.xlu1 %v2232_v34, %s2073_s7  ;;  %3834 = vst [vmem:[#allocation5_spill] sm:$0xff] %v2388_v60  ;;  %v317_v1 = vmul.f32 %v1848_v0, %v2388_v60  ;;  %v286_v0 = vmul.f32 %v281_v28, %v2466_v35  ;;  %v2776_v60 = vld [vmem:[%s3768_s3 + $0x90] sm:$0xff] }
 0x325   :  { %v2391_v61 = vpop.permute.xlu0 %447  ;;  %v2393_v62 = vpop.permute.xlu1 %323  ;;  %v321_v11 = vadd.f32 %v317_v1, %v287_v5 }
 0x327   :  { %760 = vrot.lane.b32.xlu1 %v2230_v33, %s2074_s8 }
 0x329   :  { %v2415_v6 = vpop.permute.xlu0 %475  ;;  %v326_v7 = vpop.permute.xlu1 %325 }
 0x32a   :  { %v2423_v10 = vsel %vm331_vm7, %v326_v7, %v2318_v39  ;;  %v2471_v36 = vsel %vm331_vm7, %v2393_v62, %v326_v7  ;;  %v1853_v7 = vld [vmem:[%s3768_s3 + $0x40] sm:$0xff] }
 0x32b   :  { %3836 = vst [vmem:[#allocation7_spill] sm:$0xff] %v2423_v10  ;;  %v347_v12 = vmul.f32 %v1850_v4, %v2423_v10  ;;  %764 = vrot.lane.b32.xlu1 %v2232_v34, %s2074_s8  ;;  %3839 = vst [vmem:[#allocation10_spill] sm:$0xff] %v2471_v36 }
 0x32d   :  { %v351_v16 = vadd.f32 %v347_v12, %v321_v11  ;;  %v2437_v17 = vpop.permute.xlu0 %477  ;;  %v330_v19 = vpop.permute.xlu1 %329  ;;  %v371_v11 = vcombine.high %v1851_v27, %v1851_v27  ;;  %v2481_v12 = vsel %vm301_vm5, %v298_v59, %v2364_v54  ;;  %v2497_v59 = vsel %vm272_vm6, %v2371_v56, %v2335_v46 }
 0x32e   :  { %3840 = vst [vmem:[#allocation11_spill] sm:$0xff] %v2481_v12  ;;  %3842 = vst [vmem:[#allocation13_spill] sm:$0xff] %v2497_v59  ;;  %v318_v28 = vmul.f32 %v312_v51, %v2481_v12 }
 0x32f   :  { %v381_v25 = vadd.f32 %v377_v15, %v351_v16  ;;  %v282_v15 = vcombine.high %v278_v2, %v278_v2  ;;  %v346_v16 = vmul.f32 %v341_v30, %v2471_v36  ;;  %v401_v30 = vcombine.high %v1853_v7, %v1853_v7 }
 0x331   :  { %v411_v31 = vadd.f32 %v407_v23, %v381_v25  ;;  %v354_v32 = vpop.permute.xlu1 %353  ;;  %v2476_v5 = vpop.permute.xlu0 %505  ;;  %v342_v23 = vcombine.high %v1850_v4, %v1850_v4  ;;  %v372_v25 = vcombine.high %v1852_v8, %v1852_v8  ;;  %v288_v8 = vmul.f32 %v282_v15, %v2497_v59 }
 0x332   :  { %v2486_v44 = vsel %vm361_vm2, %v354_v32, %v2324_v42  ;;  %v2502_v42 = vsel %vm331_vm7, %v2318_v39, %v330_v19 }
 0x333   :  { %v2474_v1 = vadd.f32 %v437_v29, %v411_v31  ;;  %3841 = vst [vmem:[#allocation12_spill] sm:$0xff] %v2486_v44  ;;  %3843 = vst [vmem:[#allocation14_spill] sm:$0xff] %v2502_v42  ;;  %v320_v29 = vadd.f32 %v316_v41, %v286_v0  ;;  %v376_v2 = vmul.f32 %v371_v11, %v2486_v44  ;;  %v2709_v44 = vld [vmem:[%s3768_s3 + $0x148] sm:$0xff] }
 0x334   :  { %v348_v31 = vmul.f32 %v342_v23, %v2502_v42  ;;  %v2519_v41 = vsel %vm301_vm5, %v2364_v54, %v2347_v49  ;;  %v322_v11 = vadd.f32 %v318_v28, %v288_v8  ;;  %v1855_v23 = vld [vmem:[%s3768_s3 + $0x50] sm:$0xff]  ;;  %v2537_v49 = vsel %vm272_vm6, %v2335_v46, %v2320_v40  ;;  %3865 = vst [vmem:[#allocation36_spill] sm:$0xff] %v2709_v44 }
 0x335   :  { %v360_v24 = vpop.permute.xlu1 %359  ;;  %v350_v56 = vadd.f32 %v346_v16, %v320_v29  ;;  %v2513_v18 = vpop.permute.xlu0 %507  ;;  %3845 = vst [vmem:[#allocation16_spill] sm:$0xff] %v2519_v41  ;;  %3847 = vst [vmem:[#allocation18_spill] sm:$0xff] %v2537_v49  ;;  %v315_v54 = vmul.f32 %v1847_v14, %v2519_v41  ;;  %v431_v40 = vcombine.high %v1855_v23, %v1855_v23  ;;  %v1866_v41 = vld [vmem:[%s3768_s3 + $0xa8] sm:$0xff] }
 0x336   :  { %v2509_v4 = vsel %vm361_vm2, %v2333_v45, %v360_v24  ;;  %v402_v45 = vcombine.high %v2431_v13, %v2431_v13  ;;  %v352_v13 = vadd.f32 %v348_v31, %v322_v11  ;;  %v2547_v28 = vsel %vm361_vm2, %v360_v24, %v354_v32 }
 0x337   :  { %3844 = vst [vmem:[#allocation15_spill] sm:$0xff] %v2509_v4  ;;  %v380_v0 = vadd.f32 %v376_v2, %v350_v56  ;;  %v378_v15 = vmul.f32 %v372_v25, %v2509_v4  ;;  %3849 = vst [vmem:[#allocation20_spill] sm:$0xff] %v2547_v28  ;;  %v285_v46 = vmul.f32 %v277_v20, %v2537_v49  ;;  %v2746_v4 = vld [vmem:[%s3768_s3 + $0x78] sm:$0xff]  ;;  %vm738_vm2 = vcmp.lt.s32.totalorder %v2326_v43, 120 }
 0x338   :  { %v375_v24 = vmul.f32 %v1851_v27, %v2547_v28  ;;  %v2752_v28 = vsel %vm481_vm9, %v2415_v6, %v2437_v17  ;;  %v492_v44 = vcombine.high %v2746_v4, %v2746_v4 }
 0x339   :  { %v384_v39 = vpop.permute.xlu1 %383  ;;  %v319_v32 = vadd.f32 %v315_v54, %v285_v46  ;;  %3870 = vst [vmem:[#allocation41_spill] sm:$0xff] %v2752_v28 }
 0x33a   :  { %v2524_v51 = vsel %vm391_vm3, %v384_v39, %v2345_v48  ;;  %v2542_v48 = vsel %vm331_vm7, %v330_v19, %v2393_v62  ;;  %v382_v19 = vadd.f32 %v378_v15, %v352_v13 }
 0x33b   :  { %3846 = vst [vmem:[#allocation17_spill] sm:$0xff] %v2524_v51  ;;  %v406_v16 = vmul.f32 %v401_v30, %v2524_v51  ;;  %3848 = vst [vmem:[#allocation19_spill] sm:$0xff] %v2542_v48  ;;  %v345_v62 = vmul.f32 %v1849_v22, %v2542_v48  ;;  %v2556_v30 = vpop.permute.xlu0 %535  ;;  %v2803_v48 = vld [vmem:[%s3768_s3 + $0xa0] sm:$0xff] }
 0x33d   :  { %v390_v25 = vpop.permute.xlu1 %389  ;;  %v410_v29 = vadd.f32 %v406_v16, %v380_v0  ;;  %v349_v22 = vadd.f32 %v345_v62, %v319_v32 }
 0x33e   :  { %v2552_v2 = vsel %vm391_vm3, %v2352_v50, %v390_v25  ;;  %v2561_v8 = vsel %vm391_vm3, %v390_v25, %v384_v39  ;;  %vm768_vm3 = vcmp.lt.s32.totalorder %v2326_v43, 119 }
 0x33f   :  { %3850 = vst [vmem:[#allocation21_spill] sm:$0xff] %v2552_v2  ;;  %v408_v14 = vmul.f32 %v402_v45, %v2552_v2  ;;  %3851 = vst [vmem:[#allocation22_spill] sm:$0xff] %v2561_v8  ;;  %v405_v31 = vmul.f32 %v1853_v7, %v2561_v8  ;;  %v432_v45 = vcombine.high %v2445_v21, %v2445_v21  ;;  %v2573_v0 = vpop.permute.xlu0 %537  ;;  %v2674_v2 = vld [vmem:[%s3768_s3 + $0x120] sm:$0xff] }
 0x340   :  { %v379_v39 = vadd.f32 %v375_v24, %v349_v22  ;;  %3861 = vst [vmem:[#allocation32_spill] sm:$0xff] %v2674_v2  ;;  %v2686_v8 = vld [vmem:[%s3768_s3 + $0x140] sm:$0xff] }
 0x341   :  { %v412_v56 = vadd.f32 %v408_v14, %v382_v19  ;;  %v414_v50 = vpop.permute.xlu1 %413  ;;  %3863 = vst [vmem:[#allocation34_spill] sm:$0xff] %v2686_v8 }
 0x342   :  { %v2567_v20 = vsel %vm421_vm4, %v414_v50, %v2362_v53  ;;  %v409_v7 = vadd.f32 %v405_v31, %v379_v39  ;;  %v1871_v39 = vld [vmem:[%s3768_s3 + $0xd0] sm:$0xff] }
 0x343   :  { %3852 = vst [vmem:[#allocation23_spill] sm:$0xff] %v2567_v20  ;;  %v436_v11 = vmul.f32 %v431_v40, %v2567_v20  ;;  %v2594_v40 = vpop.permute.xlu0 %565  ;;  %v658_v3 = vcombine.high %v1871_v39, %v1871_v39  ;;  %v2669_v20 = vsel %vm451_vm8, %v2381_v58, %v2391_v61  ;;  %v2695_v10 = vmul.f32 %v1871_v39, %v2230_v33  ;;  %v2714_v33 = vld [vmem:[%s3768_s3 + $0x158] sm:$0xff] }
 0x344   :  { %3860 = vst [vmem:[#allocation31_spill] sm:$0xff] %v2669_v20  ;;  %3866 = vst [vmem:[#allocation37_spill] sm:$0xff] %v2714_v33 }
 0x345   :  { %v2575_v15 = vadd.f32 %v436_v11, %v410_v29  ;;  %v420_v27 = vpop.permute.xlu1 %419 }
 0x346   :  { %v2580_v16 = vsel %vm421_vm4, %v2369_v55, %v420_v27  ;;  %v2584_v53 = vsel %vm421_vm4, %v420_v27, %v414_v50  ;;  %v2631_v27 = vld [vmem:[%s3768_s3 + $0x150] sm:$0xff]  ;;  %vm1010_vm4 = vcmask 31744  }
 0x347   :  { %3853 = vst [vmem:[#allocation24_spill] sm:$0xff] %v2580_v16  ;;  %3854 = vst [vmem:[#allocation25_spill] sm:$0xff] %v2584_v53  ;;  %v435_v54 = vmul.f32 %v1855_v23, %v2584_v53  ;;  %v438_v21 = vmul.f32 %v432_v45, %v2580_v16  ;;  %v2598_v55 = vpop.permute.xlu0 %567  ;;  %v1872_v45 = vld [vmem:[%s3768_s3 + $0xd8] sm:$0xff]  ;;  %v2663_v53 = vld [vmem:[%s3768_s3 + $0x68] sm:$0xff] }
 0x348   :  { %3855 = vst [vmem:[#allocation26_spill] sm:$0xff] %v2631_v27  ;;  %v2649_v16 = vld [vmem:[%s3768_s3 + $0x138] sm:$0xff]  ;;  %v2704_v27 = vld [vmem:[%s3768_s3 + $0x190] sm:$0xff]  ;;  %v2720_v39 = vmul.f32 %v1872_v45, %v2232_v34  ;;  %v467_v9 = vmul.f32 %v2663_v53, %v2669_v20  ;;  %v497_v20 = vmul.f32 %v2746_v4, %v2752_v28  ;;  %v521_v4 = vcombine.high %v2769_v52, %v2769_v52 }
 0x349   :  { %v2588_v13 = vadd.f32 %v435_v54, %v409_v7  ;;  %v2590_v25 = vadd.f32 %v438_v21, %v412_v56  ;;  %v2592_v29 = vpop.permute.xlu1 %443  ;;  %v659_v54 = vcombine.high %v1872_v45, %v1872_v45  ;;  %v2639_v21 = vld [vmem:[%s3768_s3 + $0x128] sm:$0xff]  ;;  %3858 = vst [vmem:[#allocation29_spill] sm:$0xff] %v2649_v16  ;;  %3864 = vst [vmem:[#allocation35_spill] sm:$0xff] %v2704_v27  ;;  %v2757_v34 = vld [vmem:[%s3768_s3 + $0x70] sm:$0xff] }
 0x34a   :  { %3856 = vst [vmem:[#allocation27_spill] sm:$0xff] %v2639_v21  ;;  %3868 = vst [vmem:[#allocation39_spill] sm:$0xff] %v2720_v39  ;;  %v471_v45 = vadd.f32 %v467_v9, %v2474_v1  ;;  %v1862_v9 = vld [vmem:[%s3768_s3 + $0x88] sm:$0xff]  ;;  %v2787_v1 = vsel %vm511_vm10, %v2476_v5, %v2513_v18  ;;  %v462_v27 = vcombine.high %v2663_v53, %v2663_v53  ;;  %v2808_v28 = vld [vmem:[%s3768_s3 + $0xb0] sm:$0xff] }
 0x34b   :  { %v2604_v14 = vpop.permute.xlu0 %595  ;;  %v2692_v42 = vmul.f32 %v659_v54, %v2242_v38  ;;  %v2717_v38 = vmul.f32 %v658_v3, %v2237_v37  ;;  %v2725_v54 = vld [vmem:[%s3768_s3 + $0x130] sm:$0xff]  ;;  %v1857_v3 = vld [vmem:[%s3768_s3 + $0x60] sm:$0xff]  ;;  %3871 = vst [vmem:[#allocation42_spill] sm:$0xff] %v2787_v1  ;;  %v491_v33 = vcombine.high %v2757_v34, %v2757_v34  ;;  %v1864_v53 = vld [vmem:[%s3768_s3 + $0x98] sm:$0xff]  ;;  %v2817_v8 = vsel %vm451_vm8, %v2592_v29, %v2381_v58 }
 0x34c   :  { %3869 = vst [vmem:[#allocation40_spill] sm:$0xff] %v2725_v54  ;;  %v461_v47 = vcombine.high %v1857_v3, %v1857_v3  ;;  %3872 = vst [vmem:[#allocation43_spill] sm:$0xff] %v2817_v8  ;;  %v522_v36 = vcombine.high %v1862_v9, %v1862_v9  ;;  %v501_v63 = vadd.f32 %v497_v20, %v471_v45  ;;  %v2843_v20 = vld [vmem:[%s3768_s3 + $0xb8] sm:$0xff] }
 0x34d   :  { %v2596_v46 = vpop.permute.xlu1 %449  ;;  %3867 = vst [vmem:[#allocation38_spill] sm:$0xff] %v2717_v38  ;;  %v527_v16 = vmul.f32 %v1862_v9, %v2787_v1  ;;  %v552_v54 = vcombine.high %v1864_v53, %v1864_v53  ;;  %v582_v9 = vcombine.high %v1866_v41, %v1866_v41  ;;  %v543_v21 = vsel %vm541_vm11, %v2556_v30, %v2573_v0 }
 0x34e   :  { %v2831_v58 = vsel %vm451_vm8, %v2596_v46, %v2592_v29  ;;  %v2849_v45 = vsel %vm451_vm8, %v2391_v61, %v2596_v46  ;;  %v466_v49 = vmul.f32 %v461_v47, %v2817_v8  ;;  %v612_v29 = vcombine.high %v2843_v20, %v2843_v20  ;;  %v2878_v47 = vld [vmem:[%s3768_s3 + $0xc8] sm:$0xff] }
 0x34f   :  { %v2608_v32 = vpop.permute.xlu0 %597  ;;  %3873 = vst [vmem:[#allocation44_spill] sm:$0xff] %v2831_v58  ;;  %v573_v1 = vsel %vm571_vm12, %v2594_v40, %v2598_v55  ;;  %v465_v2 = vmul.f32 %v1857_v3, %v2831_v58  ;;  %v531_v39 = vadd.f32 %v527_v16, %v501_v63  ;;  %v468_v38 = vmul.f32 %v462_v27, %v2849_v45 }
 0x350   :  { %v642_v58 = vcombine.high %v2878_v47, %v2878_v47  ;;  %v587_v27 = vmul.f32 %v1866_v41, %v573_v1  ;;  %v470_v35 = vadd.f32 %v466_v49, %v2575_v15 }
 0x351   :  { %v2600_v62 = vpop.permute.xlu1 %473  ;;  %v472_v41 = vadd.f32 %v468_v38, %v2590_v25 }
 0x352   :  { %v2902_v63 = vsel %vm481_vm9, %v2600_v62, %v2415_v6 }
 0x353   :  { %v2614_v50 = vpop.permute.xlu0 %625  ;;  %v496_v49 = vmul.f32 %v491_v33, %v2902_v63 }
 0x355   :  { %v2602_v19 = vpop.permute.xlu1 %479 }
 0x356   :  { %v2864_v61 = vsel %vm481_vm9, %v2602_v19, %v2600_v62  ;;  %v2884_v8 = vsel %vm481_vm9, %v2437_v17, %v2602_v19  ;;  %v557_v17 = vmul.f32 %v1864_v53, %v543_v21  ;;  %v469_v62 = vadd.f32 %v465_v2, %v2588_v13 }
 0x357   :  { %v2618_v31 = vpop.permute.xlu0 %627  ;;  %v495_v16 = vmul.f32 %v2757_v34, %v2864_v61  ;;  %v498_v21 = vmul.f32 %v492_v44, %v2884_v8 }
 0x359   :  { %v2606_v23 = vpop.permute.xlu1 %503 }
 0x35a   :  { %v2923_v34 = vsel %vm511_vm10, %v2606_v23, %v2476_v5 }
 0x35b   :  { %v2651_v57 = vpop.permute.xlu0 %672 }
 0x35d   :  { %v2610_v24 = vpop.permute.xlu1 %509 }
 0x35e   :  { %v2894_v3 = vsel %vm511_vm10, %v2610_v24, %v2606_v23  ;;  %v2910_v19 = vsel %vm511_vm10, %v2513_v18, %v2610_v24  ;;  %v502_v23 = vadd.f32 %v498_v21, %v472_v41  ;;  %v526_v24 = vmul.f32 %v521_v4, %v2923_v34 }
 0x35f   :  { %v2771_v12 = vpop.permute.xlu0 %676  ;;  %v525_v18 = vmul.f32 %v2769_v52, %v2894_v3  ;;  %v528_v2 = vmul.f32 %v522_v36, %v2910_v19  ;;  %v603_v52 = vsel %vm601_vm13, %v2604_v14, %v2608_v32 }
 0x361   :  { %v2612_v56 = vpop.permute.xlu1 %533  ;;  %v532_v4 = vadd.f32 %v528_v2, %v502_v23 }
 0x363   :  { %v2866_v46 = vpop.permute.xlu0 %702 }
 0x364   :  { %3874 = vst [vmem:[#allocation45_spill] sm:$0xff] %v2866_v46 }
 0x365   :  { %v2616_v22 = vpop.permute.xlu1 %539 }
 0x366   :  { %v545_v6 = vsel %vm541_vm11, %v2616_v22, %v2612_v56  ;;  %v542_v44 = vsel %vm541_vm11, %v2573_v0, %v2616_v22  ;;  %v499_v0 = vadd.f32 %v495_v16, %v469_v62  ;;  %v544_v22 = vsel %vm541_vm11, %v2612_v56, %v2556_v30 }
 0x367   :  { %v2934_v15 = vpop.permute.xlu0 %706  ;;  %v555_v25 = vmul.f32 %v2776_v60, %v545_v6  ;;  %v558_v33 = vmul.f32 %v552_v54, %v542_v44  ;;  %v3875_v16 = vcombine.high %v2776_v60, %v2776_v60  ;;  %v3876_v44 = vcombine.high %v2803_v48, %v2803_v48 }
 0x368   :  { %v529_v38 = vadd.f32 %v525_v18, %v499_v0  ;;  %v561_v0 = vadd.f32 %v557_v17, %v531_v39 }
 0x369   :  { %v2620_v11 = vpop.permute.xlu1 %563  ;;  %v556_v21 = vmul.f32 %v3875_v16, %v544_v22  ;;  %v3878_v22 = vcombine.high %v2836_v26, %v2836_v26 }
 0x36a   :  { %v574_v30 = vsel %vm571_vm12, %v2620_v11, %v2594_v40  ;;  %v559_v6 = vadd.f32 %v555_v25, %v529_v38  ;;  %v3011_v25 = vld [vmem:[%s3768_s3 + $0x188] sm:$0xff] }
 0x36b   :  { %v2978_v62 = vpop.permute.xlu0 %732  ;;  %v586_v41 = vmul.f32 %v3876_v44, %v574_v30 }
 0x36d   :  { %v2634_v7 = vpop.permute.xlu1 %569 }
 0x36e   :  { %v575_v5 = vsel %vm571_vm12, %v2634_v7, %v2620_v11  ;;  %v572_v36 = vsel %vm571_vm12, %v2598_v55, %v2634_v7  ;;  %v500_v7 = vadd.f32 %v496_v49, %v470_v35 }
 0x36f   :  { %v585_v1 = vmul.f32 %v2803_v48, %v575_v5  ;;  %v588_v56 = vmul.f32 %v582_v9, %v572_v36  ;;  %v2988_v9 = vld [vmem:[%s3768_s3 + $0x168] sm:$0xff]  ;;  %v617_v48 = vmul.f32 %v2843_v20, %v603_v52  ;;  %v591_v52 = vadd.f32 %v587_v27, %v561_v0 }
 0x370   :  { %v530_v18 = vadd.f32 %v526_v24, %v500_v7  ;;  %v864_v39 = vcombine.high %v2988_v9, %v2988_v9  ;;  %v1874_v20 = vld [vmem:[%s3768_s3 + $0xe8] sm:$0xff] }
 0x371   :  { %v2689_v51 = vpop.permute.xlu1 %593  ;;  %v589_v49 = vadd.f32 %v585_v1, %v559_v6  ;;  %v898_v1 = vcombine.high %v3011_v25, %v3011_v25  ;;  %v689_v30 = vcombine.high %v1874_v20, %v1874_v20  ;;  %v1875_v6 = vld [vmem:[%s3768_s3 + $0xf0] sm:$0xff] }
 0x372   :  { %v604_v40 = vsel %vm601_vm13, %v2689_v51, %v2604_v14  ;;  %v560_v36 = vadd.f32 %v556_v21, %v530_v18 }
 0x374   :  { %v590_v24 = vadd.f32 %v586_v41, %v560_v36 }
 0x375   :  { %v2778_v37 = vpop.permute.xlu1 %599 }
 0x376   :  { %v602_v53 = vsel %vm601_vm13, %v2608_v32, %v2778_v37  ;;  %v605_v55 = vsel %vm601_vm13, %v2778_v37, %v2689_v51  ;;  %v562_v37 = vadd.f32 %v558_v33, %v532_v4  ;;  %v1876_v33 = vld [vmem:[%s3768_s3 + $0xf8] sm:$0xff] }
 0x377   :  { %v615_v60 = vmul.f32 %v2808_v28, %v605_v55  ;;  %v618_v11 = vmul.f32 %v612_v29, %v602_v53  ;;  %v737_v53 = vpop.permute.xlu0 %736 }
 0x378   :  { %v592_v51 = vadd.f32 %v588_v56, %v562_v37 }
 0x379   :  { %v2838_v59 = vpop.permute.xlu1 %623 }
 0x37a   :  { %v634_v14 = vsel %vm631_vm14, %v2838_v59, %v2614_v50  ;;  %v622_v17 = vadd.f32 %v618_v11, %v592_v51 }
 0x37d   :  { %v630_v46 = vpop.permute.xlu1 %629 }
 0x37e   :  { %v632_v32 = vsel %vm631_vm14, %v2618_v31, %v630_v46  ;;  %v635_v35 = vsel %vm631_vm14, %v630_v46, %v2838_v59  ;;  %v633_v46 = vsel %vm631_vm14, %v2614_v50, %v2618_v31  ;;  %v3005_v31 = vld [vmem:[%s3768_s3 + $0x178] sm:$0xff]  ;;  %v3877_v59 = vcombine.high %v2808_v28, %v2808_v28 }
 0x37f   :  { %v645_v29 = vmul.f32 %v2836_v26, %v635_v35  ;;  %v648_v2 = vmul.f32 %v642_v58, %v632_v32  ;;  %v619_v58 = vadd.f32 %v615_v60, %v589_v49  ;;  %v647_v23 = vmul.f32 %v2878_v47, %v633_v46  ;;  %v1873_v47 = vld [vmem:[%s3768_s3 + $0xe0] sm:$0xff]  ;;  %v1878_v60 = vld [vmem:[%s3768_s3 + $0x108] sm:$0xff] }
 0x380   :  { %v616_v50 = vmul.f32 %v3877_v59, %v604_v40  ;;  %v646_v28 = vmul.f32 %v3878_v22, %v634_v14  ;;  %v881_v38 = vcombine.high %v3005_v31, %v3005_v31  ;;  %v621_v26 = vadd.f32 %v617_v48, %v591_v52  ;;  %v3879_v14 = vld [vmem:[#allocation45_spill] sm:$0xff]  ;;  %v3880_v22 = vld [vmem:[#allocation38_spill] sm:$0xff] }
 0x381   :  { %v2940_v13 = vpop.permute.xlu1 %670  ;;  %v649_v55 = vadd.f32 %v645_v29, %v619_v58  ;;  %v652_v27 = vadd.f32 %v648_v2, %v622_v17  ;;  %v688_v56 = vcombine.high %v1873_v47, %v1873_v47  ;;  %v719_v32 = vcombine.high %v1876_v33, %v1876_v33  ;;  %v3085_v59 = vld [vmem:[%s3768_s3 + $0x198] sm:$0xff] }
 0x382   :  { %v620_v4 = vadd.f32 %v616_v50, %v590_v24  ;;  %v681_v16 = vsel %vm678_vm15, %v2940_v13, %v2651_v57  ;;  %v682_v21 = vsel %vm678_vm15, %v2771_v12, %v2940_v13  ;;  %v651_v35 = vadd.f32 %v647_v23, %v621_v26  ;;  %v3055_v13 = vld [vmem:[%s3768_s3 + $0x118] sm:$0xff] }
 0x383   :  { %v718_v40 = vcombine.high %v1875_v6, %v1875_v6  ;;  %v669_v11 = vadd.f32 %v2692_v42, %v652_v27  ;;  %v666_v46 = vadd.f32 %v2695_v10, %v649_v55  ;;  %v692_v49 = vmul.f32 %v1873_v47, %v681_v16  ;;  %v1877_v10 = vld [vmem:[%s3768_s3 + $0x100] sm:$0xff]  ;;  %v3881_v55 = vld [vmem:[#allocation39_spill] sm:$0xff] }
 0x384   :  { %v650_v37 = vadd.f32 %v646_v28, %v620_v4  ;;  %v695_v51 = vmul.f32 %v689_v30, %v682_v21  ;;  %v749_v2 = vcombine.high %v1878_v60, %v1878_v60  ;;  %v748_v0 = vcombine.high %v1877_v10, %v1877_v10 }
 0x385   :  { %v675_v54 = vpop.permute.xlu1 %674  ;;  %v696_v23 = vadd.f32 %v692_v49, %v666_v46  ;;  %v668_v27 = vadd.f32 %v3881_v55, %v651_v35  ;;  %v915_v30 = vcombine.high %v3085_v59, %v3085_v59 }
 0x386   :  { %v679_v18 = vsel %vm678_vm15, %v675_v54, %v2771_v12  ;;  %v680_v44 = vsel %vm678_vm15, %v2651_v57, %v675_v54  ;;  %v763_v12 = vpop.permute.xlu0 %762  ;;  %v779_v57 = vcombine.high %v3055_v13, %v3055_v13  ;;  %v699_v24 = vadd.f32 %v695_v51, %v669_v11 }
 0x387   :  { %v693_v54 = vmul.f32 %v688_v56, %v680_v44  ;;  %v694_v48 = vmul.f32 %v1874_v20, %v679_v18  ;;  %v667_v28 = vadd.f32 %v3880_v22, %v650_v37 }
 0x389   :  { %v701_v5 = vpop.permute.xlu1 %700  ;;  %v698_v35 = vadd.f32 %v694_v48, %v668_v27  ;;  %v3887_v48 = vld [vmem:[#allocation8_spill] sm:$0xff] }
 0x38a   :  { %v711_v29 = vsel %vm708_vm0, %v701_v5, %v3879_v14  ;;  %v712_v42 = vsel %vm708_vm0, %v2934_v15, %v701_v5 }
 0x38b   :  { %v722_v50 = vmul.f32 %v1875_v6, %v711_v29  ;;  %v725_v58 = vmul.f32 %v719_v32, %v712_v42  ;;  %v767_v6 = vpop.permute.xlu0 %766  ;;  %v697_v32 = vadd.f32 %v693_v54, %v667_v28  ;;  %v3884_v42 = vld [vmem:[#allocation18_spill] sm:$0xff] }
 0x38d   :  { %v705_v7 = vpop.permute.xlu1 %704  ;;  %v726_v37 = vadd.f32 %v722_v50, %v696_v23  ;;  %v729_v11 = vadd.f32 %v725_v58, %v699_v24  ;;  %v3889_v50 = vld [vmem:[#allocation16_spill] sm:$0xff]  ;;  %v3890_v58 = vld [vmem:[#allocation29_spill] sm:$0xff] }
 0x38e   :  { %v709_v17 = vsel %vm708_vm0, %v705_v7, %v2934_v15  ;;  %v710_v20 = vsel %vm708_vm0, %v3879_v14, %v705_v7  ;;  %v1879_v7 = vld [vmem:[%s3768_s3 + $0x110] sm:$0xff] }
 0x38f   :  { %v723_v56 = vmul.f32 %v718_v40, %v710_v20  ;;  %v724_v16 = vmul.f32 %v1876_v33, %v709_v17  ;;  %v778_v21 = vcombine.high %v1879_v7, %v1879_v7  ;;  %v3882_v33 = vld [vmem:[#allocation9_spill] sm:$0xff]  ;;  %v3883_v14 = vld [vmem:[#allocation32_spill] sm:$0xff]  ;;  %v3891_v17 = vcombine.high %v3890_v58, %v3890_v58 }
 0x390   :  { %v799_v29 = vmul.f32 %v3883_v14, %v3882_v33  ;;  %v3904_v33 = vld [vmem:[#allocation26_spill] sm:$0xff] }
 0x391   :  { %v731_v41 = vpop.permute.xlu1 %730  ;;  %v819_v20 = vmul.f32 %v3891_v17, %v3889_v50  ;;  %v3910_v17 = vld [vmem:[#allocation14_spill] sm:$0xff] }
 0x392   :  { %v741_v36 = vsel %vm738_vm2, %v731_v41, %v2978_v62  ;;  %v742_v5 = vsel %vm738_vm2, %v737_v53, %v731_v41 }
 0x393   :  { %v752_v47 = vmul.f32 %v1877_v10, %v741_v36  ;;  %v755_v26 = vmul.f32 %v749_v2, %v742_v5  ;;  %v3885_v10 = vld [vmem:[#allocation27_spill] sm:$0xff]  ;;  %v3888_v36 = vld [vmem:[#allocation40_spill] sm:$0xff] }
 0x394   :  { %v3886_v2 = vcombine.high %v3885_v10, %v3885_v10  ;;  %v816_v5 = vmul.f32 %v3888_v36, %v3887_v48 }
 0x395   :  { %v735_v52 = vpop.permute.xlu1 %734  ;;  %v756_v41 = vadd.f32 %v752_v47, %v726_v37  ;;  %v759_v49 = vadd.f32 %v755_v26, %v729_v11  ;;  %v3896_v37 = vld [vmem:[#allocation34_spill] sm:$0xff] }
 0x396   :  { %v739_v4 = vsel %vm738_vm2, %v735_v52, %v737_v53  ;;  %v740_v15 = vsel %vm738_vm2, %v2978_v62, %v735_v52  ;;  %v802_v54 = vmul.f32 %v3886_v2, %v3884_v42  ;;  %v3906_v42 = vld [vmem:[#allocation37_spill] sm:$0xff] }
 0x397   :  { %v753_v46 = vmul.f32 %v748_v0, %v740_v15  ;;  %v754_v18 = vmul.f32 %v1878_v60, %v739_v4  ;;  %v727_v0 = vadd.f32 %v723_v56, %v697_v32  ;;  %v728_v60 = vadd.f32 %v724_v16, %v698_v35  ;;  %v3892_v15 = vld [vmem:[#allocation6_spill] sm:$0xff]  ;;  %v3894_v16 = vld [vmem:[#allocation13_spill] sm:$0xff] }
 0x398   :  { %v801_v32 = vmul.f32 %v3885_v10, %v3894_v16  ;;  %v3895_v35 = vld [vmem:[#allocation10_spill] sm:$0xff]  ;;  %v3907_v10 = vcombine.high %v3906_v42, %v3906_v42 }
 0x399   :  { %v761_v53 = vpop.permute.xlu1 %760  ;;  %v757_v24 = vadd.f32 %v753_v46, %v727_v0  ;;  %v758_v22 = vadd.f32 %v754_v18, %v728_v60  ;;  %v833_v11 = vmul.f32 %v3896_v37, %v3895_v35  ;;  %v3918_v16 = vld [vmem:[#allocation30_spill] sm:$0xff]  ;;  %v3919_v35 = vld [vmem:[#allocation25_spill] sm:$0xff] }
 0x39a   :  { %v771_v62 = vsel %vm768_vm3, %v761_v53, %v763_v12  ;;  %v772_v44 = vsel %vm768_vm3, %v767_v6, %v761_v53  ;;  %v3898_v53 = vld [vmem:[#allocation36_spill] sm:$0xff] }
 0x39b   :  { %v782_v51 = vmul.f32 %v1879_v7, %v771_v62  ;;  %v785_v40 = vmul.f32 %v779_v57, %v772_v44  ;;  %v3893_v7 = vcombine.high %v3883_v14, %v3883_v14  ;;  %v3899_v43 = vcombine.high %v3898_v53, %v3898_v53  ;;  %v3900_v62 = vld [vmem:[#allocation5_spill] sm:$0xff] }
 0x39c   :  { %v3901_v44 = vcombine.high %v3888_v36, %v3888_v36  ;;  %v3909_v36 = vcombine.high %v3896_v37, %v3896_v37  ;;  %v1897_v37 = vld [vmem:[%s3768_s3 + $0x1a0] sm:$0xff] }
 0x39d   :  { %v786_v52 = vadd.f32 %v782_v51, %v756_v41  ;;  %v789_v57 = vadd.f32 %v785_v40, %v759_v49  ;;  %v765_v23 = vpop.permute.xlu1 %764  ;;  %v800_v56 = vmul.f32 %v3893_v7, %v3892_v15  ;;  %v3902_v49 = vld [vmem:[#allocation11_spill] sm:$0xff]  ;;  %v3903_v40 = vld [vmem:[#allocation12_spill] sm:$0xff] }
 0x39e   :  { %v769_v28 = vsel %vm768_vm3, %v765_v23, %v767_v6  ;;  %v770_v55 = vsel %vm768_vm3, %v763_v12, %v765_v23  ;;  %v3897_v6 = vld [vmem:[#allocation19_spill] sm:$0xff]  ;;  %v817_v41 = vmul.f32 %v3901_v44, %v3900_v62  ;;  %v818_v51 = vmul.f32 %v3890_v58, %v3902_v49  ;;  %v3913_v23 = vld [vmem:[#allocation22_spill] sm:$0xff]  ;;  %v3924_v44 = vld [vmem:[#allocation33_spill] sm:$0xff] }
 0x39f   :  { %v803_v27 = vadd.f32 %v799_v29, %v786_v52  ;;  %v806_v47 = vadd.f32 %v802_v54, %v789_v57  ;;  %v783_v26 = vmul.f32 %v778_v21, %v770_v55  ;;  %v784_v4 = vmul.f32 %v3055_v13, %v769_v28  ;;  %v3905_v29 = vld [vmem:[#allocation20_spill] sm:$0xff]  ;;  %v3916_v15 = vld [vmem:[#allocation15_spill] sm:$0xff] }
 0x3a0   :  { %v836_v12 = vmul.f32 %v3899_v43, %v3897_v6  ;;  %v850_v14 = vmul.f32 %v3904_v33, %v3903_v40  ;;  %v853_v2 = vmul.f32 %v3907_v10, %v3905_v29  ;;  %v835_v58 = vmul.f32 %v3898_v53, %v3910_v17  ;;  %v3912_v52 = vld [vmem:[#allocation28_spill] sm:$0xff]  ;;  %v3923_v62 = vld [vmem:[#allocation43_spill] sm:$0xff] }
 0x3a1   :  { %v820_v46 = vadd.f32 %v816_v5, %v803_v27  ;;  %v823_v21 = vadd.f32 %v819_v20, %v806_v47  ;;  %v787_v18 = vadd.f32 %v783_v26, %v757_v24  ;;  %v788_v13 = vadd.f32 %v784_v4, %v758_v22  ;;  %v3908_v5 = vld [vmem:[#allocation7_spill] sm:$0xff]  ;;  %v3911_v20 = vld [vmem:[#allocation17_spill] sm:$0xff]  ;;  %v3914_v47 = vld [vmem:[#allocation2_spill] sm:$0xff] }
 0x3a2   :  { %v834_v50 = vmul.f32 %v3909_v36, %v3908_v5  ;;  %v867_v57 = vmul.f32 %v3912_v52, %v3911_v20  ;;  %v870_v24 = vmul.f32 %v864_v39, %v3913_v23  ;;  %v3915_v26 = vcombine.high %v3904_v33, %v3904_v33  ;;  %v3930_v17 = vld [vmem:[#allocation31_spill] sm:$0xff] }
 0x3a3   :  { %v837_v54 = vadd.f32 %v833_v11, %v820_v46  ;;  %v840_v0 = vadd.f32 %v836_v12, %v823_v21  ;;  %v804_v60 = vadd.f32 %v800_v56, %v787_v18  ;;  %v805_v48 = vadd.f32 %v801_v32, %v788_v13  ;;  %v3917_v56 = vld [vmem:[#allocation23_spill] sm:$0xff]  ;;  %v3922_v18 = vld [vmem:[#allocation21_spill] sm:$0xff] }
 0x3a4   :  { %v851_v4 = vmul.f32 %v3915_v26, %v3914_v47  ;;  %v852_v7 = vmul.f32 %v3906_v42, %v3916_v15  ;;  %v884_v32 = vmul.f32 %v3918_v16, %v3917_v56  ;;  %v887_v39 = vmul.f32 %v881_v38, %v3919_v35  ;;  %v3920_v12 = vld [vmem:[#allocation3_spill] sm:$0xff]  ;;  %v3925_v38 = vld [vmem:[#allocation44_spill] sm:$0xff]  ;;  %v3934_v15 = vld [vmem:[#allocation42_spill] sm:$0xff] }
 0x3a5   :  { %v854_v22 = vadd.f32 %v850_v14, %v837_v54  ;;  %v857_v28 = vadd.f32 %v853_v2, %v840_v0  ;;  %v821_v55 = vadd.f32 %v817_v41, %v804_v60  ;;  %v822_v27 = vadd.f32 %v818_v51, %v805_v48  ;;  %v1898_v51 = vld [vmem:[%s3768_s3 + $0x1a8] sm:$0xff]  ;;  %v3926_v42 = vld [vmem:[#allocation4_spill] sm:$0xff] }
 0x3a6   :  { %v3921_v46 = vcombine.high %v3912_v52, %v3912_v52  ;;  %v869_v13 = vmul.f32 %v2988_v9, %v3922_v18  ;;  %v901_v41 = vmul.f32 %v3924_v44, %v3923_v62  ;;  %v904_v49 = vmul.f32 %v898_v1, %v3925_v38  ;;  %v3928_v54 = vld [vmem:[#allocation24_spill] sm:$0xff]  ;;  %v3929_v60 = vld [vmem:[#allocation35_spill] sm:$0xff] }
 0x3a7   :  { %v871_v11 = vadd.f32 %v867_v57, %v854_v22  ;;  %v874_v6 = vadd.f32 %v870_v24, %v857_v28  ;;  %v838_v53 = vadd.f32 %v834_v50, %v821_v55  ;;  %v839_v43 = vadd.f32 %v835_v58, %v822_v27  ;;  %v3932_v28 = vld [vmem:[#allocation41_spill] sm:$0xff] }
 0x3a8   :  { %v868_v21 = vmul.f32 %v3921_v46, %v3920_v12  ;;  %v3927_v9 = vcombine.high %v3918_v16, %v3918_v16  ;;  %v931_v2 = vcombine.high %v1897_v37, %v1897_v37  ;;  %v886_v0 = vmul.f32 %v3005_v31, %v3928_v54 }
 0x3a9   :  { %v888_v40 = vadd.f32 %v884_v32, %v871_v11  ;;  %v855_v33 = vadd.f32 %v851_v4, %v838_v53  ;;  %v856_v14 = vadd.f32 %v852_v7, %v839_v43  ;;  %v891_v29 = vadd.f32 %v887_v39, %v874_v6 }
 0x3aa   :  { %v885_v10 = vmul.f32 %v3927_v9, %v3926_v42  ;;  %v918_v1 = vmul.f32 %v3929_v60, %v2902_v63  ;;  %v3931_v58 = vcombine.high %v3924_v44, %v3924_v44  ;;  %v903_v52 = vmul.f32 %v3011_v25, %v2849_v45 }
 0x3ab   :  { %v872_v48 = vadd.f32 %v868_v21, %v855_v33  ;;  %v873_v5 = vadd.f32 %v869_v13, %v856_v14  ;;  %v905_v36 = vadd.f32 %v901_v41, %v888_v40  ;;  %v908_v50 = vadd.f32 %v904_v49, %v891_v29 }
 0x3ac   :  { %v902_v20 = vmul.f32 %v3931_v58, %v3930_v17  ;;  %v921_v31 = vmul.f32 %v915_v30, %v2864_v61  ;;  %v932_v57 = vcombine.high %v1898_v51, %v1898_v51  ;;  %v935_v63 = vmul.f32 %v1897_v37, %v2923_v34 }
 0x3ad   :  { %v889_v23 = vadd.f32 %v885_v10, %v872_v48  ;;  %v890_v24 = vadd.f32 %v886_v0, %v873_v5  ;;  %v922_v22 = vadd.f32 %v918_v1, %v905_v36  ;;  %v3933_v55 = vcombine.high %v3929_v60, %v3929_v60  ;;  %v943_v10 = vld [vmem:[%s3767_s4] sm:$0xf] }
 0x3ae   :  { %v920_v47 = vmul.f32 %v3085_v59, %v2884_v8  ;;  %v925_v26 = vadd.f32 %v921_v31, %v908_v50  ;;  %v936_v61 = vmul.f32 %v931_v2, %v3934_v15  ;;  %v937_v30 = vmul.f32 %v1898_v51, %v2910_v19  ;;  %v1007_v15 = vld [vmem:[%s3769_s2 + $0x28] sm:$0xff] }
 0x3af   :  { %v919_v27 = vmul.f32 %v3933_v55, %v3932_v28  ;;  %v906_v45 = vadd.f32 %v902_v20, %v889_v23  ;;  %v907_v25 = vadd.f32 %v903_v52, %v890_v24  ;;  %v939_v4 = vadd.f32 %v935_v63, %v922_v22 }
 0x3b0   :  { %v938_v34 = vmul.f32 %v932_v57, %v2894_v3  ;;  %v2075_v38 = vmov 2   ;;  %v2076_v60 = vmov 3   ;;  %v3935_v5 = vmov 0  }
 0x3b1   :  { %v923_v7 = vadd.f32 %v919_v27, %v906_v45  ;;  %v924_v56 = vadd.f32 %v920_v47, %v907_v25  ;;  %v953_v39 = vmul.f32 %v939_v4, %v939_v4  ;;  %v944_v37 = vsel %vm203_vm1, %v939_v4, 0.0  ;;  %1975 = vset.pattern.permute.xlu1 %v2075_v38  ;;  %v1002_v27 = vld [vmem:[%s3769_s2] sm:$0xff]  ;;  %v1003_v45 = vld [vmem:[%s3769_s2 + $0x8] sm:$0xff]  ;;  %v1004_v25 = vld [vmem:[%s3769_s2 + $0x10] sm:$0xff] }
 0x3b2   :  { %v942_v35 = vadd.f32 %v938_v34, %v925_v26  ;;  %v3936_v47 = vmov 0.0   ;;  %v1005_v26 = vld [vmem:[%s3769_s2 + $0x18] sm:$0xff] }
 0x3b3   :  { %v940_v16 = vadd.f32 %v936_v61, %v923_v7  ;;  %v941_v32 = vadd.f32 %v937_v30, %v924_v56  ;;  %v957_v19 = vsel %vm203_vm1, %v953_v39, 0.0  ;;  %v1008_v61 = vld [vmem:[%s3769_s2 + $0x30] sm:$0xff]  ;;  %v1009_v30 = vld [vmem:[%s3769_s2 + $0x38] sm:$0xff] }
 0x3b4   :  { %v956_v43 = vmul.f32 %v942_v35, %v942_v35  ;;  %v949_v21 = vsel %vm203_vm1, %v942_v35, 0.0 }
 0x3b5   :  { %v945_v8 = vsel %vm203_vm1, %v940_v16, 0.0  ;;  %v954_v59 = vmul.f32 %v940_v16, %v940_v16  ;;  %v955_v11 = vmul.f32 %v941_v32, %v941_v32  ;;  %v947_v53 = vsel %vm203_vm1, %v941_v32, 0.0 }
 0x3b6   :  { %v946_v6 = vadd.f32 %v945_v8, %v944_v37  ;;  %v962_v44 = vsel %vm203_vm1, %v956_v43, 0.0 }
 0x3b7   :  { %v958_v3 = vsel %vm203_vm1, %v954_v59, 0.0  ;;  %v960_v18 = vsel %vm203_vm1, %v955_v11, 0.0 }
 0x3b8   :  { %v948_v12 = vadd.f32 %v947_v53, %v946_v6  ;;  %v959_v46 = vadd.f32 %v958_v3, %v957_v19 }
 0x3ba   :  { %v950_v13 = vadd.f32 %v949_v21, %v948_v12  ;;  %v961_v62 = vadd.f32 %v960_v18, %v959_v46 }
 0x3bc   :  { %951 = vadd.xlane.f32.xlu1 %v950_v13  ;;  %v963_v41 = vadd.f32 %v962_v44, %v961_v62 }
 0x3be   :  { %964 = vadd.xlane.f32.xlu0 %v963_v41 }
 0x449   :  { %v952_v49 = vpop.xlane.xlu1 %951 }
 0x44a   :  { %v966_v51 = vmul.f32 0.001953125, %v952_v49 }
 0x44b   :  { %v965_v40 = vpop.xlane.xlu0 %964 }
 0x44c   :  { %v968_v33 = vmul.f32 %v966_v51, %v966_v51  ;;  %v967_v14 = vmul.f32 0.001953125, %v965_v40 }
 0x44e   :  { %v969_v29 = vsub.f32 %v967_v14, %v968_v33 }
 0x450   :  { %v970_v42 = vmax.f32 %v969_v29, 0.0 }
 0x452   :  { %v971_v9 = vadd.f32 1e-05, %v970_v42 }
 0x454   :  { %2037 = vrsqrt.f32 %v971_v9 }
 0x45e   :  { %v2038_v2 = vpop.eup %2037 }
 0x45f   :  { %v973_v54 = vmul.f32 %v2038_v2, %v943_v10 }
 0x461   :  { %982 = vperm.xlu1 %1975, %v973_v54   ;;  %v974_v0 = vmul.f32 %v973_v54, %v966_v51 }
 0x463   :  { %976 = vrot.lane.b32.xlu0 %v974_v0, %s2058_s16 }
 0x465   :  { %1976 = vset.pattern.permute.xlu1 %v2076_v60 }
 0x4d5   :  { %v977_v1 = vpop.permute.xlu0 %976 }
 0x4d6   :  { %v979_v48 = vsub.f32 %v943_v10, %v977_v1 }
 0x4d8   :  { %991 = vperm.xlu1 %1976, %v979_v48  }
 0x4dc   :  { %1978 = vset.pattern.permute.xlu1 %v3935_v5 }
 0x4e0   :  { %v983_v36 = vpop.permute.xlu1 %982 }
 0x4e1   :  { %v985_v50 = vmul.f32 %v983_v36, %v939_v4  ;;  %v986_v17 = vmul.f32 %v983_v36, %v940_v16  ;;  %v987_v58 = vmul.f32 %v983_v36, %v941_v32  ;;  %v988_v20 = vmul.f32 %v983_v36, %v942_v35  ;;  %v1006_v4 = vld [vmem:[%s3769_s2 + $0x20] sm:$0xff] }
 0x557   :  { %v992_v52 = vpop.permute.xlu1 %991 }
 0x558   :  { %v994_v31 = vadd.f32 %v992_v52, %v985_v50  ;;  %v995_v57 = vadd.f32 %v992_v52, %v986_v17  ;;  %v996_v63 = vadd.f32 %v992_v52, %v987_v58  ;;  %v997_v23 = vadd.f32 %v992_v52, %v988_v20 }
 0x55a   :  { %v998_v24 = vmax.f32 %v994_v31, 0.0  ;;  %v999_v22 = vmax.f32 %v995_v57, 0.0  ;;  %v1000_v28 = vmax.f32 %v996_v63, 0.0  ;;  %v1001_v55 = vmax.f32 %v997_v23, 0.0 }
 0x55c   :  { %1899 = vmatprep.subr.msk.mxu0 %vm203_vm1, %v999_v22  ;;  %1909 = vmatprep.subr.msk.mxu1 %vm203_vm1, %v1001_v55 }
 0x55d   :  { %1900 = vmatpush1.msk.msra.mxu0 %vm203_vm1, %v998_v24  ;;  %1910 = vmatpush1.msk.msra.mxu1 %vm203_vm1, %v1000_v28 }
 0x55e   :  { %1901 = vmatmul.mubr.msk.f32.vlgmr.msra.gmra.mrb[2].mxu0 %vm1010_vm4, %v1002_v27  ;;  %1911 = vmatmul.mubr.msk.f32.vlgmr.msra.gmra.mrb[2].mxu1 %vm1010_vm4, %v1002_v27 }
 0x55f   :  { %1117 = vmatprep.mubr.f32.mxu0 %v3936_v47  ;;  %1230 = vmatprep.mubr.f32.mxu1 %v3936_v47 }
 0x562   :  { %1902 = vmatmul.mubr.msk.f32.gmra.mrb[4].mxu0 %vm1010_vm4, %v1003_v45  ;;  %1912 = vmatmul.mubr.msk.f32.gmra.mrb[4].mxu1 %vm1010_vm4, %v1003_v45 }
 0x563   :  { %1123 = vmatprep.mubr.f32.mxu0 %v3936_v47  ;;  %1236 = vmatprep.mubr.f32.mxu1 %v3936_v47 }
 0x566   :  { %1903 = vmatmul.mubr.msk.f32.gmra.mrb[6].mxu0 %vm1010_vm4, %v1004_v25  ;;  %1913 = vmatmul.mubr.msk.f32.gmra.mrb[6].mxu1 %vm1010_vm4, %v1004_v25 }
 0x567   :  { %1129 = vmatprep.mubr.f32.mxu0 %v3936_v47  ;;  %1242 = vmatprep.mubr.f32.mxu1 %v3936_v47 }
 0x56a   :  { %1904 = vmatmul.mubr.msk.f32.gmra.mrb[8].mxu0 %vm1010_vm4, %v1005_v26  ;;  %1914 = vmatmul.mubr.msk.f32.gmra.mrb[8].mxu1 %vm1010_vm4, %v1005_v26 }
 0x56b   :  { %1135 = vmatprep.mubr.f32.mxu0 %v3936_v47  ;;  %1248 = vmatprep.mubr.f32.mxu1 %v3936_v47 }
 0x56e   :  { %1905 = vmatmul.mubr.msk.f32.gmra.mrb[10].mxu0 %vm1010_vm4, %v1006_v4  ;;  %1915 = vmatmul.mubr.msk.f32.gmra.mrb[10].mxu1 %vm1010_vm4, %v1006_v4 }
 0x56f   :  { %1141 = vmatprep.mubr.f32.mxu0 %v3936_v47  ;;  %1254 = vmatprep.mubr.f32.mxu1 %v3936_v47 }
 0x572   :  { %1906 = vmatmul.mubr.msk.f32.gmra.mrb[12].mxu0 %vm1010_vm4, %v1007_v15  ;;  %1916 = vmatmul.mubr.msk.f32.gmra.mrb[12].mxu1 %vm1010_vm4, %v1007_v15 }
 0x573   :  { %1147 = vmatprep.mubr.f32.mxu0 %v3936_v47  ;;  %1260 = vmatprep.mubr.f32.mxu1 %v3936_v47 }
 0x576   :  { %1907 = vmatmul.mubr.msk.f32.gmra.mrb[14].mxu0 %vm1010_vm4, %v1008_v61  ;;  %1917 = vmatmul.mubr.msk.f32.gmra.mrb[14].mxu1 %vm1010_vm4, %v1008_v61 }
 0x577   :  { %1153 = vmatprep.mubr.f32.mxu0 %v3936_v47  ;;  %1266 = vmatprep.mubr.f32.mxu1 %v3936_v47 }
 0x57a   :  { %1908 = vmatmul.mubr.msk.f32.gmra.mrb[16].mxu0 %vm1010_vm4, %v1009_v30  ;;  %1918 = vmatmul.mubr.msk.f32.gmra.mrb[16].mxu1 %vm1010_vm4, %v1009_v30 }
 0x631   :  { %v3291_v34 = vpop.f32.mrb[2].mxu0  ;;  %v3293_v7 = vpop.f32.mrb[2].mxu1 }
 0x632   :  { %v1353_v56 = vmul.f32 %v3291_v34, %v3291_v34  ;;  %v3297_v16 = vpop.f32.mrb[3].mxu0  ;;  %v3299_v32 = vpop.f32.mrb[3].mxu1  ;;  %v1355_v37 = vmul.f32 %v3293_v7, %v3293_v7 }
 0x633   :  { %v1313_v35 = vadd.f32 %v3297_v16, %v3291_v34  ;;  %v1354_v39 = vmul.f32 %v3297_v16, %v3297_v16  ;;  %v1356_v12 = vmul.f32 %v3299_v32, %v3299_v32 }
 0x635   :  { %v3307_v8 = vpop.f32.mrb[4].mxu0  ;;  %v3309_v59 = vpop.f32.mrb[4].mxu1  ;;  %v1314_v11 = vadd.f32 %v1313_v35, %v3293_v7  ;;  %v1385_v6 = vadd.f32 %v1354_v39, %v1353_v56 }
 0x636   :  { %v1357_v53 = vmul.f32 %v3307_v8, %v3307_v8  ;;  %v3314_v43 = vpop.f32.mrb[5].mxu0  ;;  %v1359_v19 = vmul.f32 %v3309_v59, %v3309_v59  ;;  %v3318_v3 = vpop.f32.mrb[5].mxu1 }
 0x637   :  { %v1318_v46 = vadd.f32 %v3314_v43, %v3307_v8  ;;  %v1358_v21 = vmul.f32 %v3314_v43, %v3314_v43  ;;  %v1315_v18 = vadd.f32 %v1314_v11, %v3299_v32  ;;  %v1386_v13 = vadd.f32 %v1385_v6, %v1355_v37 }
 0x638   :  { %v1360_v33 = vmul.f32 %v3318_v3, %v3318_v3 }
 0x639   :  { %1316 = vadd.xlane.f32.xlu0 %v1315_v18  ;;  %v1387_v62 = vadd.f32 %v1386_v13, %v1356_v12  ;;  %v3327_v44 = vpop.f32.mrb[6].mxu0  ;;  %v3329_v41 = vpop.f32.mrb[6].mxu1  ;;  %v1390_v38 = vadd.f32 %v1358_v21, %v1357_v53  ;;  %v1319_v49 = vadd.f32 %v1318_v46, %v3309_v59 }
 0x63a   :  { %v1361_v51 = vmul.f32 %v3327_v44, %v3327_v44  ;;  %v3334_v40 = vpop.f32.mrb[7].mxu0  ;;  %v3338_v14 = vpop.f32.mrb[7].mxu1  ;;  %v1363_v2 = vmul.f32 %v3329_v41, %v3329_v41 }
 0x63b   :  { %1388 = vadd.xlane.f32.xlu1 %v1387_v62  ;;  %v1323_v29 = vadd.f32 %v3334_v40, %v3327_v44  ;;  %v1362_v42 = vmul.f32 %v3334_v40, %v3334_v40  ;;  %v1391_v9 = vadd.f32 %v1390_v38, %v1359_v19  ;;  %v1320_v10 = vadd.f32 %v1319_v49, %v3318_v3 }
 0x63c   :  { %v1364_v58 = vmul.f32 %v3338_v14, %v3338_v14 }
 0x63d   :  { %v1392_v54 = vadd.f32 %v1391_v9, %v1360_v33  ;;  %v3347_v0 = vpop.f32.mrb[8].mxu0  ;;  %v3349_v60 = vpop.f32.mrb[8].mxu1  ;;  %v1324_v1 = vadd.f32 %v1323_v29, %v3329_v41  ;;  %v1395_v48 = vadd.f32 %v1362_v42, %v1361_v51 }
 0x63e   :  { %v1365_v5 = vmul.f32 %v3347_v0, %v3347_v0  ;;  %v3354_v36 = vpop.f32.mrb[9].mxu0  ;;  %v1367_v50 = vmul.f32 %v3349_v60, %v3349_v60  ;;  %v3358_v17 = vpop.f32.mrb[9].mxu1 }
 0x63f   :  { %1393 = vadd.xlane.f32.xlu0 %v1392_v54  ;;  %1321 = vadd.xlane.f32.xlu1 %v1320_v10  ;;  %v1328_v20 = vadd.f32 %v3354_v36, %v3347_v0  ;;  %v1366_v52 = vmul.f32 %v3354_v36, %v3354_v36  ;;  %v1325_v31 = vadd.f32 %v1324_v1, %v3338_v14 }
 0x640   :  { %v1396_v57 = vadd.f32 %v1395_v48, %v1363_v2  ;;  %v1368_v22 = vmul.f32 %v3358_v17, %v3358_v17 }
 0x641   :  { %v3367_v63 = vpop.f32.mrb[10].mxu0  ;;  %v3369_v23 = vpop.f32.mrb[10].mxu1  ;;  %v1329_v24 = vadd.f32 %v1328_v20, %v3349_v60  ;;  %v1400_v28 = vadd.f32 %v1366_v52, %v1365_v5 }
 0x642   :  { %v1369_v55 = vmul.f32 %v3367_v63, %v3367_v63  ;;  %v3376_v27 = vpop.f32.mrb[11].mxu0  ;;  %v1371_v47 = vmul.f32 %v3369_v23, %v3369_v23  ;;  %v1397_v45 = vadd.f32 %v1396_v57, %v1364_v58  ;;  %v3380_v25 = vpop.f32.mrb[11].mxu1 }
 0x643   :  { %v1333_v26 = vadd.f32 %v3376_v27, %v3367_v63  ;;  %v1370_v4 = vmul.f32 %v3376_v27, %v3376_v27  ;;  %1326 = vadd.xlane.f32.xlu0 %v1325_v31  ;;  %v1330_v15 = vadd.f32 %v1329_v24, %v3358_v17  ;;  %v1401_v61 = vadd.f32 %v1400_v28, %v1367_v50 }
 0x644   :  { %1398 = vadd.xlane.f32.xlu1 %v1397_v45  ;;  %v1372_v37 = vmul.f32 %v3380_v25, %v3380_v25 }
 0x645   :  { %v3387_v30 = vpop.f32.mrb[12].mxu0  ;;  %v1334_v56 = vadd.f32 %v1333_v26, %v3369_v23  ;;  %v3390_v35 = vpop.f32.mrb[12].mxu1  ;;  %v1402_v39 = vadd.f32 %v1401_v61, %v1368_v22  ;;  %v1405_v11 = vadd.f32 %v1370_v4, %v1369_v55 }
 0x646   :  { %v1373_v6 = vmul.f32 %v3387_v30, %v3387_v30  ;;  %v3396_v53 = vpop.f32.mrb[13].mxu0  ;;  %v3398_v19 = vpop.f32.mrb[13].mxu1  ;;  %v1375_v13 = vmul.f32 %v3390_v35, %v3390_v35 }
 0x647   :  { %1331 = vadd.xlane.f32.xlu0 %v1330_v15  ;;  %v1338_v12 = vadd.f32 %v3396_v53, %v3387_v30  ;;  %v1374_v46 = vmul.f32 %v3396_v53, %v3396_v53  ;;  %v1335_v21 = vadd.f32 %v1334_v56, %v3380_v25  ;;  %v1406_v18 = vadd.f32 %v1405_v11, %v1371_v47 }
 0x648   :  { %v1376_v10 = vmul.f32 %v3398_v19, %v3398_v19 }
 0x649   :  { %1336 = vadd.xlane.f32.xlu1 %v1335_v21  ;;  %v3407_v62 = vpop.f32.mrb[14].mxu0  ;;  %v3409_v38 = vpop.f32.mrb[14].mxu1  ;;  %v1407_v49 = vadd.f32 %v1406_v18, %v1372_v37  ;;  %v1339_v51 = vadd.f32 %v1338_v12, %v3390_v35  ;;  %v1410_v33 = vadd.f32 %v1374_v46, %v1373_v6 }
 0x64a   :  { %v1377_v29 = vmul.f32 %v3407_v62, %v3407_v62  ;;  %v3414_v42 = vpop.f32.mrb[15].mxu0  ;;  %v3416_v9 = vpop.f32.mrb[15].mxu1  ;;  %v1379_v1 = vmul.f32 %v3409_v38, %v3409_v38 }
 0x64b   :  { %v1343_v2 = vadd.f32 %v3414_v42, %v3407_v62  ;;  %v1378_v54 = vmul.f32 %v3414_v42, %v3414_v42  ;;  %1403 = vadd.xlane.f32.xlu0 %v1402_v39  ;;  %v1340_v48 = vadd.f32 %v1339_v51, %v3398_v19  ;;  %v1411_v5 = vadd.f32 %v1410_v33, %v1375_v13 }
 0x64c   :  { %v1380_v20 = vmul.f32 %v3416_v9, %v3416_v9 }
 0x64d   :  { %v1415_v50 = vadd.f32 %v1378_v54, %v1377_v29  ;;  %v1344_v58 = vadd.f32 %v1343_v2, %v3409_v38  ;;  %1408 = vadd.xlane.f32.xlu1 %v1407_v49  ;;  %v3430_v52 = vpop.f32.mrb[16].mxu0  ;;  %v3432_v31 = vpop.f32.mrb[16].mxu1  ;;  %v1412_v28 = vadd.f32 %v1411_v5, %v1376_v10 }
 0x64e   :  { %v1381_v57 = vmul.f32 %v3430_v52, %v3430_v52  ;;  %v3436_v24 = vpop.f32.mrb[17].mxu0  ;;  %v1383_v22 = vmul.f32 %v3432_v31, %v3432_v31  ;;  %v3440_v55 = vpop.f32.mrb[17].mxu1 }
 0x64f   :  { %v1416_v47 = vadd.f32 %v1415_v50, %v1379_v1  ;;  %v1345_v45 = vadd.f32 %v1344_v58, %v3416_v9  ;;  %1341 = vadd.xlane.f32.xlu0 %v1340_v48  ;;  %v1348_v26 = vadd.f32 %v3436_v24, %v3430_v52  ;;  %v1382_v4 = vmul.f32 %v3436_v24, %v3436_v24 }
 0x650   :  { %v1384_v61 = vmul.f32 %v3440_v55, %v3440_v55 }
 0x651   :  { %v1420_v15 = vadd.f32 %v1382_v4, %v1381_v57  ;;  %1346 = vadd.xlane.f32.xlu1 %v1345_v45  ;;  %v1417_v56 = vadd.f32 %v1416_v47, %v1380_v20  ;;  %v1349_v39 = vadd.f32 %v1348_v26, %v3432_v31 }
 0x653   :  { %1413 = vadd.xlane.f32.xlu0 %v1412_v28  ;;  %v1350_v37 = vadd.f32 %v1349_v39, %v3440_v55  ;;  %v1421_v11 = vadd.f32 %v1420_v15, %v1383_v22 }
 0x655   :  { %1418 = vadd.xlane.f32.xlu1 %v1417_v56  ;;  %v1422_v6 = vadd.f32 %v1421_v11, %v1384_v61 }
 0x657   :  { %1351 = vadd.xlane.f32.xlu0 %v1350_v37 }
 0x65b   :  { %1423 = vadd.xlane.f32.xlu0 %v1422_v6  ;;  %v3460_v6 = vld [vmem:[%s3770_s5] sm:$0xff] }
 0x6c6   :  { %v1317_v12 = vpop.xlane.xlu0 %1316 }
 0x6c7   :  { %v1425_v46 = vmul.f32 0.001953125, %v1317_v12 }
 0x6c8   :  { %v1389_v21 = vpop.xlane.xlu1 %1388 }
 0x6c9   :  { %v1441_v18 = vmul.f32 %v1425_v46, %v1425_v46  ;;  %v1433_v13 = vmul.f32 0.001953125, %v1389_v21 }
 0x6cb   :  { %v1449_v49 = vsub.f32 %v1433_v13, %v1441_v18 }
 0x6cc   :  { %v1394_v51 = vpop.xlane.xlu0 %1393  ;;  %v1322_v33 = vpop.xlane.xlu1 %1321 }
 0x6cd   :  { %v1457_v29 = vmax.f32 %v1449_v49, 0.0  ;;  %v1426_v10 = vmul.f32 0.001953125, %v1322_v33  ;;  %v1434_v54 = vmul.f32 0.001953125, %v1394_v51 }
 0x6cf   :  { %v1465_v2 = vadd.f32 1e-05, %v1457_v29  ;;  %v1442_v1 = vmul.f32 %v1426_v10, %v1426_v10 }
 0x6d0   :  { %v1327_v48 = vpop.xlane.xlu0 %1326 }
 0x6d1   :  { %2039 = vrsqrt.f32 %v1465_v2  ;;  %v1450_v5 = vsub.f32 %v1434_v54, %v1442_v1  ;;  %v1427_v50 = vmul.f32 0.001953125, %v1327_v48  ;;  %v1399_v58 = vpop.xlane.xlu1 %1398 }
 0x6d2   :  { %v1435_v22 = vmul.f32 0.001953125, %v1399_v58 }
 0x6d3   :  { %v1458_v20 = vmax.f32 %v1450_v5, 0.0  ;;  %v1443_v57 = vmul.f32 %v1427_v50, %v1427_v50  ;;  %v3471_v5 = vld [vmem:[%s3770_s5 + $0x8] sm:$0xff] }
 0x6d4   :  { %v1332_v28 = vpop.xlane.xlu0 %1331 }
 0x6d5   :  { %v1466_v47 = vadd.f32 1e-05, %v1458_v20  ;;  %v1451_v45 = vsub.f32 %v1435_v22, %v1443_v57  ;;  %v3451_v26 = vmul.f32 0.001953125, %v1332_v28 }
 0x6d6   :  { %v1337_v4 = vpop.xlane.xlu1 %1336 }
 0x6d7   :  { %2041 = vrsqrt.f32 %v1466_v47  ;;  %v1459_v15 = vmax.f32 %v1451_v45, 0.0  ;;  %v3453_v61 = vmul.f32 0.001953125, %v1337_v4  ;;  %v1444_v37 = vmul.f32 %v3451_v26, %v3451_v26 }
 0x6d8   :  { %v1404_v56 = vpop.xlane.xlu0 %1403 }
 0x6d9   :  { %v1467_v39 = vadd.f32 1e-05, %v1459_v15  ;;  %v1436_v11 = vmul.f32 0.001953125, %v1404_v56  ;;  %v1445_v18 = vmul.f32 %v3453_v61, %v3453_v61 }
 0x6da   :  { %v1409_v12 = vpop.xlane.xlu1 %1408 }
 0x6db   :  { %v2040_v21 = vpop.eup %2039  ;;  %2043 = vrsqrt.f32 %v1467_v39  ;;  %v1452_v13 = vsub.f32 %v1436_v11, %v1444_v37  ;;  %v1437_v49 = vmul.f32 0.001953125, %v1409_v12  ;;  %v3478_v11 = vld [vmem:[%s3770_s5 + $0x10] sm:$0xff] }
 0x6dc   :  { %v1342_v51 = vpop.xlane.xlu0 %1341  ;;  %v3465_v33 = vmul.f32 %v2040_v21, %v3460_v6 }
 0x6dd   :  { %v1460_v29 = vmax.f32 %v1452_v13, 0.0  ;;  %v1453_v2 = vsub.f32 %v1437_v49, %v1445_v18  ;;  %v1430_v54 = vmul.f32 0.001953125, %v1342_v51 }
 0x6de   :  { %v1347_v1 = vpop.xlane.xlu1 %1346  ;;  %v1489_v48 = vmul.f32 %v3465_v33, %v1425_v46 }
 0x6df   :  { %v1468_v58 = vadd.f32 1e-05, %v1460_v29  ;;  %v1461_v20 = vmax.f32 %v1453_v2, 0.0  ;;  %v1431_v57 = vmul.f32 0.001953125, %v1347_v1  ;;  %v1446_v45 = vmul.f32 %v1430_v54, %v1430_v54 }
 0x6e0   :  { %v1414_v22 = vpop.xlane.xlu0 %1413  ;;  %1505 = vrot.lane.b32.xlu1 %v1489_v48, %s2058_s16 }
 0x6e1   :  { %v2042_v28 = vpop.eup %2041  ;;  %2045 = vrsqrt.f32 %v1468_v58  ;;  %v1469_v47 = vadd.f32 1e-05, %v1461_v20  ;;  %v1438_v4 = vmul.f32 0.001953125, %v1414_v22  ;;  %v1447_v46 = vmul.f32 %v1431_v57, %v1431_v57 }
 0x6e2   :  { %v1482_v15 = vmul.f32 %v2042_v28, %v3471_v5  ;;  %v1419_v56 = vpop.xlane.xlu1 %1418 }
 0x6e3   :  { %2047 = vrsqrt.f32 %v1469_v47  ;;  %v1454_v39 = vsub.f32 %v1438_v4, %v1446_v45  ;;  %v1439_v37 = vmul.f32 0.001953125, %v1419_v56  ;;  %v1309_v4 = vld [vmem:[%s3770_s5 + $0x20] sm:$0xff] }
 0x6e4   :  { %v1490_v12 = vmul.f32 %v1482_v15, %v1426_v10  ;;  %v1352_v21 = vpop.xlane.xlu0 %1351  ;;  %v1308_v10 = vld [vmem:[%s3770_s5 + $0x18] sm:$0xff] }
 0x6e5   :  { %v2044_v18 = vpop.eup %2043  ;;  %v1462_v13 = vmax.f32 %v1454_v39, 0.0  ;;  %v1455_v49 = vsub.f32 %v1439_v37, %v1447_v46  ;;  %v1432_v51 = vmul.f32 0.001953125, %v1352_v21 }
 0x6e6   :  { %1507 = vrot.lane.b32.xlu0 %v1490_v12, %s2058_s16  ;;  %v1483_v29 = vmul.f32 %v2044_v18, %v3478_v11  ;;  %v1310_v18 = vld [vmem:[%s3770_s5 + $0x28] sm:$0xff] }
 0x6e7   :  { %v1470_v2 = vadd.f32 1e-05, %v1462_v13  ;;  %v1463_v1 = vmax.f32 %v1455_v49, 0.0  ;;  %v1448_v22 = vmul.f32 %v1432_v51, %v1432_v51  ;;  %v1311_v49 = vld [vmem:[%s3770_s5 + $0x30] sm:$0xff] }
 0x6e8   :  { %v1424_v48 = vpop.xlane.xlu0 %1423  ;;  %v1491_v58 = vmul.f32 %v1483_v29, %v1427_v50 }
 0x6e9   :  { %2049 = vrsqrt.f32 %v1470_v2  ;;  %v1471_v20 = vadd.f32 1e-05, %v1463_v1  ;;  %v1440_v28 = vmul.f32 0.001953125, %v1424_v48 }
 0x6ea   :  { %1509 = vrot.lane.b32.xlu1 %v1491_v58, %s2058_s16 }
 0x6eb   :  { %v2046_v47 = vpop.eup %2045  ;;  %2051 = vrsqrt.f32 %v1471_v20  ;;  %v1456_v45 = vsub.f32 %v1440_v28, %v1448_v22 }
 0x6ec   :  { %v1484_v56 = vmul.f32 %v2046_v47, %v1308_v10 }
 0x6ed   :  { %v2048_v46 = vpop.eup %2047  ;;  %v1464_v50 = vmax.f32 %v1456_v45, 0.0 }
 0x6ee   :  { %v1492_v39 = vmul.f32 %v1484_v56, %v3451_v26  ;;  %v1485_v37 = vmul.f32 %v2048_v46, %v1309_v4 }
 0x6ef   :  { %v1472_v12 = vadd.f32 1e-05, %v1464_v50 }
 0x6f0   :  { %1511 = vrot.lane.b32.xlu1 %v1492_v39, %s2058_s16  ;;  %v1493_v21 = vmul.f32 %v1485_v37, %v3453_v61  ;;  %v1312_v61 = vld [vmem:[%s3770_s5 + $0x38] sm:$0xff] }
 0x6f1   :  { %2053 = vrsqrt.f32 %v1472_v12 }
 0x6f2   :  { %1513 = vrot.lane.b32.xlu0 %v1493_v21, %s2058_s16 }
 0x6f3   :  { %v2050_v13 = vpop.eup %2049 }
 0x6f4   :  { %v1486_v2 = vmul.f32 %v2050_v13, %v1310_v18 }
 0x6f5   :  { %v2052_v26 = vpop.eup %2051 }
 0x6f6   :  { %v1494_v1 = vmul.f32 %v1486_v2, %v1430_v54  ;;  %v1487_v48 = vmul.f32 %v2052_v26, %v1311_v49  ;;  %v3937_v54 = vmov 1  }
 0x6f8   :  { %1515 = vrot.lane.b32.xlu1 %v1494_v1, %s2058_s16  ;;  %v1495_v58 = vmul.f32 %v1487_v48, %v1431_v57 }
 0x6fa   :  { %1517 = vrot.lane.b32.xlu0 %v1495_v58, %s2058_s16 }
 0x6fb   :  { %v2054_v20 = vpop.eup %2053 }
 0x6fc   :  { %v1488_v22 = vmul.f32 %v2054_v20, %v1312_v61  ;;  %v1714_v20 = vld [vmem:[%s3765_s0 + $0x8] sm:$0xff] }
 0x6fe   :  { %1571 = vperm.xlu0 %1977, %v3465_v33   ;;  %v1496_v28 = vmul.f32 %v1488_v22, %v1432_v51 }
 0x700   :  { %1519 = vrot.lane.b32.xlu1 %v1496_v28, %s2058_s16 }
 0x702   :  { %1586 = vperm.xlu0 %1977, %v1484_v56  }
 0x704   :  { %1576 = vperm.xlu1 %1978, %v1482_v15  }
 0x706   :  { %1596 = vperm.xlu0 %1977, %v1486_v2  }
 0x708   :  { %1581 = vperm.xlu1 %1978, %v1483_v29  }
 0x70a   :  { %1606 = vperm.xlu0 %1977, %v1488_v22   ;;  %v1715_v22 = vld [vmem:[%s3765_s0 + $0x10] sm:$0xff] }
 0x70c   :  { %1591 = vperm.xlu1 %1978, %v1485_v37  }
 0x70e   :  { %1980 = vset.pattern.permute.xlu0 %v3937_v54 }
 0x710   :  { %1601 = vperm.xlu1 %1978, %v1487_v48  }
 0x714   :  { %1979 = vset.pattern.permute.xlu1 %v3937_v54 }
 0x752   :  { %v1506_v57 = vpop.permute.xlu1 %1505 }
 0x753   :  { %v1529_v47 = vsub.f32 %v3460_v6, %v1506_v57 }
 0x755   :  { %1643 = vperm.xlu1 %1979, %v1529_v47  }
 0x758   :  { %v1508_v45 = vpop.permute.xlu0 %1507 }
 0x759   :  { %v1530_v33 = vsub.f32 %v3471_v5, %v1508_v45 }
 0x75b   :  { %1648 = vperm.xlu0 %1980, %v1530_v33  }
 0x75c   :  { %v1510_v51 = vpop.permute.xlu1 %1509 }
 0x75d   :  { %v1531_v15 = vsub.f32 %v3478_v11, %v1510_v51 }
 0x75f   :  { %1653 = vperm.xlu1 %1979, %v1531_v15  }
 0x762   :  { %v1512_v29 = vpop.permute.xlu1 %1511 }
 0x763   :  { %v1532_v56 = vsub.f32 %v1308_v10, %v1512_v29 }
 0x764   :  { %v1514_v46 = vpop.permute.xlu0 %1513 }
 0x765   :  { %v1533_v50 = vsub.f32 %v1309_v4, %v1514_v46  ;;  %1658 = vperm.xlu1 %1979, %v1532_v56  }
 0x767   :  { %1663 = vperm.xlu0 %1980, %v1533_v50  }
 0x76a   :  { %v1516_v39 = vpop.permute.xlu1 %1515 }
 0x76b   :  { %v1534_v37 = vsub.f32 %v1310_v18, %v1516_v39 }
 0x76c   :  { %v1518_v12 = vpop.permute.xlu0 %1517 }
 0x76d   :  { %v1535_v21 = vsub.f32 %v1311_v49, %v1518_v12  ;;  %1668 = vperm.xlu1 %1979, %v1534_v37  }
 0x76f   :  { %1673 = vperm.xlu0 %1980, %v1535_v21   ;;  %v1717_v21 = vld [vmem:[%s3765_s0 + $0x20] sm:$0xff] }
 0x772   :  { %v1520_v6 = vpop.permute.xlu1 %1519 }
 0x773   :  { %v1536_v13 = vsub.f32 %v1312_v61, %v1520_v6  ;;  %v1713_v61 = vld [vmem:[%s3765_s0] sm:$0xff]  ;;  %v1718_v6 = vld [vmem:[%s3765_s0 + $0x28] sm:$0xff] }
 0x775   :  { %1678 = vperm.xlu1 %1979, %v1536_v13  }
 0x77d   :  { %v1572_v2 = vpop.permute.xlu0 %1571 }
 0x77e   :  { %v1609_v18 = vmul.f32 %v1572_v2, %v3291_v34  ;;  %v1610_v49 = vmul.f32 %v1572_v2, %v3297_v16  ;;  %v1611_v48 = vmul.f32 %v1572_v2, %v3293_v7  ;;  %v1612_v58 = vmul.f32 %v1572_v2, %v3299_v32  ;;  %v1716_v34 = vld [vmem:[%s3765_s0 + $0x18] sm:$0xff] }
 0x781   :  { %v3511_v11 = vpop.permute.xlu0 %1586 }
 0x783   :  { %v1577_v5 = vpop.permute.xlu1 %1576 }
 0x784   :  { %v1613_v15 = vmul.f32 %v1577_v5, %v3307_v8  ;;  %v1614_v29 = vmul.f32 %v1577_v5, %v3314_v43  ;;  %v1615_v56 = vmul.f32 %v1577_v5, %v3309_v59  ;;  %v1616_v46 = vmul.f32 %v1577_v5, %v3318_v3  ;;  %v1719_v8 = vld [vmem:[%s3765_s0 + $0x30] sm:$0xff]  ;;  %v1720_v59 = vld [vmem:[%s3765_s0 + $0x38] sm:$0xff] }
 0x785   :  { %v3515_v10 = vpop.permute.xlu0 %1596 }
 0x787   :  { %v1582_v26 = vpop.permute.xlu1 %1581 }
 0x789   :  { %v3535_v57 = vpop.permute.xlu0 %1606 }
 0x78b   :  { %v3513_v1 = vpop.permute.xlu1 %1591 }
 0x78f   :  { %v3517_v4 = vpop.permute.xlu1 %1601 }
 0x7d4   :  { %v1644_v16 = vpop.permute.xlu1 %1643 }
 0x7d5   :  { %v1681_v7 = vadd.f32 %v1644_v16, %v1609_v18  ;;  %v1682_v28 = vadd.f32 %v1644_v16, %v1610_v49  ;;  %v1683_v32 = vadd.f32 %v1644_v16, %v1611_v48  ;;  %v1684_v54 = vadd.f32 %v1644_v16, %v1612_v58  ;;  %v1721_v16 = vld [vmem:[%s3765_s0 + $0x40] sm:$0xff] }
 0x7d7   :  { %v1745_v47 = vadd.f32 %v1713_v61, %v1681_v7  ;;  %v1746_v45 = vadd.f32 %v1714_v20, %v1682_v28  ;;  %v1747_v33 = vadd.f32 %v1715_v22, %v1683_v32  ;;  %v1748_v51 = vadd.f32 %v1716_v34, %v1684_v54  ;;  %v1722_v7 = vld [vmem:[%s3765_s0 + $0x48] sm:$0xff] }
 0x7d8   :  { %v1617_v61 = vmul.f32 %v1582_v26, %v3327_v44  ;;  %v1618_v20 = vmul.f32 %v1582_v26, %v3334_v40  ;;  %v1619_v22 = vmul.f32 %v1582_v26, %v3329_v41  ;;  %v1620_v34 = vmul.f32 %v1582_v26, %v3338_v14  ;;  %v1723_v44 = vld [vmem:[%s3765_s0 + $0x50] sm:$0xff]  ;;  %v1724_v41 = vld [vmem:[%s3765_s0 + $0x58] sm:$0xff] }
 0x7d9   :  { %v1777_v50 = vmax.f32 %v1745_v47, 0.0  ;;  %v1778_v39 = vmax.f32 %v1746_v45, 0.0  ;;  %v1779_v37 = vmax.f32 %v1747_v33, 0.0  ;;  %v1780_v12 = vmax.f32 %v1748_v51, 0.0 }
 0x7da   :  { %v1649_v43 = vpop.permute.xlu0 %1648 }
 0x7db   :  { %1809 = vst [vmem:[%s3771_s6] sm:$0xff] %v1777_v50  ;;  %1810 = vst [vmem:[%s3771_s6 + $0x8] sm:$0xff] %v1778_v39  ;;  %v1685_v3 = vadd.f32 %v1649_v43, %v1613_v15  ;;  %v1686_v13 = vadd.f32 %v1649_v43, %v1614_v29  ;;  %v1687_v5 = vadd.f32 %v1649_v43, %v1615_v56 }
 0x7dc   :  { %1811 = vst [vmem:[%s3771_s6 + $0x10] sm:$0xff] %v1779_v37  ;;  %1812 = vst [vmem:[%s3771_s6 + $0x18] sm:$0xff] %v1780_v12  ;;  %v1688_v2 = vadd.f32 %v1649_v43, %v1616_v46  ;;  %v1621_v46 = vmul.f32 %v3511_v11, %v3347_v0  ;;  %v1622_v50 = vmul.f32 %v3511_v11, %v3354_v36  ;;  %v1725_v12 = vld [vmem:[%s3765_s0 + $0x60] sm:$0xff]  ;;  %v1727_v36 = vld [vmem:[%s3765_s0 + $0x70] sm:$0xff] }
 0x7dd   :  { %v1749_v18 = vadd.f32 %v1717_v21, %v1685_v3  ;;  %v1750_v49 = vadd.f32 %v1718_v6, %v1686_v13  ;;  %v1751_v48 = vadd.f32 %v1719_v8, %v1687_v5  ;;  %v1623_v39 = vmul.f32 %v3511_v11, %v3349_v60  ;;  %v1726_v21 = vld [vmem:[%s3765_s0 + $0x68] sm:$0xff]  ;;  %v1728_v60 = vld [vmem:[%s3765_s0 + $0x78] sm:$0xff] }
 0x7de   :  { %v1752_v58 = vadd.f32 %v1720_v59, %v1688_v2  ;;  %v1654_v28 = vpop.permute.xlu1 %1653  ;;  %v1624_v37 = vmul.f32 %v3511_v11, %v3358_v17  ;;  %v1625_v5 = vmul.f32 %v3513_v1, %v3367_v63  ;;  %v1626_v2 = vmul.f32 %v3513_v1, %v3376_v27  ;;  %v1729_v63 = vld [vmem:[%s3765_s0 + $0x80] sm:$0xff] }
 0x7df   :  { %v1781_v32 = vmax.f32 %v1749_v18, 0.0  ;;  %v1782_v54 = vmax.f32 %v1750_v49, 0.0  ;;  %v1783_v47 = vmax.f32 %v1751_v48, 0.0  ;;  %v1689_v40 = vadd.f32 %v1654_v28, %v1617_v61  ;;  %v1731_v61 = vld [vmem:[%s3765_s0 + $0x90] sm:$0xff] }
 0x7e0   :  { %v1784_v45 = vmax.f32 %v1752_v58, 0.0  ;;  %v1690_v14 = vadd.f32 %v1654_v28, %v1618_v20  ;;  %v1691_v26 = vadd.f32 %v1654_v28, %v1619_v22  ;;  %v1692_v33 = vadd.f32 %v1654_v28, %v1620_v34  ;;  %v1730_v58 = vld [vmem:[%s3765_s0 + $0x88] sm:$0xff]  ;;  %v1732_v20 = vld [vmem:[%s3765_s0 + $0x98] sm:$0xff] }
 0x7e1   :  { %1813 = vst [vmem:[%s3771_s6 + $0x20] sm:$0xff] %v1781_v32  ;;  %1814 = vst [vmem:[%s3771_s6 + $0x28] sm:$0xff] %v1782_v54  ;;  %v1753_v51 = vadd.f32 %v1721_v16, %v1689_v40  ;;  %v1627_v18 = vmul.f32 %v3513_v1, %v3369_v23  ;;  %v1628_v49 = vmul.f32 %v3513_v1, %v3380_v25 }
 0x7e2   :  { %1815 = vst [vmem:[%s3771_s6 + $0x30] sm:$0xff] %v1783_v47  ;;  %1816 = vst [vmem:[%s3771_s6 + $0x38] sm:$0xff] %v1784_v45  ;;  %v1754_v15 = vadd.f32 %v1722_v7, %v1690_v14  ;;  %v1755_v29 = vadd.f32 %v1723_v44, %v1691_v26  ;;  %v1756_v56 = vadd.f32 %v1724_v41, %v1692_v33 }
 0x7e3   :  { %v1785_v6 = vmax.f32 %v1753_v51, 0.0  ;;  %v1629_v14 = vmul.f32 %v3515_v10, %v3387_v30  ;;  %v1630_v26 = vmul.f32 %v3515_v10, %v3396_v53  ;;  %v1631_v33 = vmul.f32 %v3515_v10, %v3390_v35  ;;  %v1733_v30 = vld [vmem:[%s3765_s0 + $0xa0] sm:$0xff]  ;;  %v1734_v35 = vld [vmem:[%s3765_s0 + $0xa8] sm:$0xff] }
 0x7e4   :  { %v1786_v8 = vmax.f32 %v1754_v15, 0.0  ;;  %v1787_v0 = vmax.f32 %v1755_v29, 0.0  ;;  %v1788_v59 = vmax.f32 %v1756_v56, 0.0  ;;  %v1659_v17 = vpop.permute.xlu1 %1658  ;;  %v1632_v51 = vmul.f32 %v3515_v10, %v3398_v19  ;;  %v1735_v29 = vld [vmem:[%s3765_s0 + $0xb0] sm:$0xff]  ;;  %v1736_v56 = vld [vmem:[%s3765_s0 + $0xb8] sm:$0xff] }
 0x7e5   :  { %v1693_v11 = vadd.f32 %v1659_v17, %v1621_v46  ;;  %v1694_v43 = vadd.f32 %v1659_v17, %v1622_v50  ;;  %v1695_v3 = vadd.f32 %v1659_v17, %v1623_v39  ;;  %v1696_v13 = vadd.f32 %v1659_v17, %v1624_v37  ;;  %1817 = vst [vmem:[%s3771_s6 + $0x40] sm:$0xff] %v1785_v6 }
 0x7e6   :  { %1818 = vst [vmem:[%s3771_s6 + $0x48] sm:$0xff] %v1786_v8  ;;  %1819 = vst [vmem:[%s3771_s6 + $0x50] sm:$0xff] %v1787_v0  ;;  %v1664_v23 = vpop.permute.xlu0 %1663  ;;  %v1634_v6 = vmul.f32 %v3517_v4, %v3414_v42  ;;  %v1635_v8 = vmul.f32 %v3517_v4, %v3409_v38  ;;  %v1636_v0 = vmul.f32 %v3517_v4, %v3416_v9  ;;  %v1739_v38 = vld [vmem:[%s3765_s0 + $0xd0] sm:$0xff]  ;;  %v1740_v42 = vld [vmem:[%s3765_s0 + $0xd8] sm:$0xff] }
 0x7e7   :  { %1820 = vst [vmem:[%s3771_s6 + $0x58] sm:$0xff] %v1788_v59  ;;  %v1757_v27 = vadd.f32 %v1725_v12, %v1693_v11  ;;  %v1758_v25 = vadd.f32 %v1726_v21, %v1694_v43  ;;  %v1759_v1 = vadd.f32 %v1727_v36, %v1695_v3  ;;  %v1760_v48 = vadd.f32 %v1728_v60, %v1696_v13  ;;  %v1737_v59 = vld [vmem:[%s3765_s0 + $0xc0] sm:$0xff] }
 0x7e8   :  { %v1697_v22 = vadd.f32 %v1664_v23, %v1625_v5  ;;  %v1698_v34 = vadd.f32 %v1664_v23, %v1626_v2  ;;  %v1699_v16 = vadd.f32 %v1664_v23, %v1627_v18  ;;  %v1700_v7 = vadd.f32 %v1664_v23, %v1628_v49 }
 0x7e9   :  { %v1789_v28 = vmax.f32 %v1757_v27, 0.0  ;;  %v1790_v32 = vmax.f32 %v1758_v25, 0.0  ;;  %v1791_v54 = vmax.f32 %v1759_v1, 0.0  ;;  %v1792_v47 = vmax.f32 %v1760_v48, 0.0  ;;  %v1741_v1 = vld [vmem:[%s3765_s0 + $0xe0] sm:$0xff]  ;;  %v1742_v48 = vld [vmem:[%s3765_s0 + $0xe8] sm:$0xff] }
 0x7ea   :  { %v1761_v45 = vadd.f32 %v1729_v63, %v1697_v22  ;;  %v1762_v44 = vadd.f32 %v1730_v58, %v1698_v34  ;;  %v1763_v41 = vadd.f32 %v1731_v61, %v1699_v16  ;;  %v1764_v40 = vadd.f32 %v1732_v20, %v1700_v7 }
 0x7eb   :  { %1821 = vst [vmem:[%s3771_s6 + $0x60] sm:$0xff] %v1789_v28  ;;  %1822 = vst [vmem:[%s3771_s6 + $0x68] sm:$0xff] %v1790_v32  ;;  %v1633_v21 = vmul.f32 %v3517_v4, %v3407_v62  ;;  %v1738_v62 = vld [vmem:[%s3765_s0 + $0xc8] sm:$0xff]  ;;  %v1637_v58 = vmul.f32 %v3535_v57, %v3430_v52  ;;  %v1638_v61 = vmul.f32 %v3535_v57, %v3436_v24  ;;  %v1743_v32 = vld [vmem:[%s3765_s0 + $0xf0] sm:$0xff] }
 0x7ec   :  { %1823 = vst [vmem:[%s3771_s6 + $0x70] sm:$0xff] %v1791_v54  ;;  %1824 = vst [vmem:[%s3771_s6 + $0x78] sm:$0xff] %v1792_v47  ;;  %v1793_v53 = vmax.f32 %v1761_v45, 0.0  ;;  %v1794_v19 = vmax.f32 %v1762_v44, 0.0  ;;  %v1795_v10 = vmax.f32 %v1763_v41, 0.0  ;;  %v1796_v15 = vmax.f32 %v1764_v40, 0.0  ;;  %v1669_v46 = vpop.permute.xlu1 %1668 }
 0x7ed   :  { %v1701_v50 = vadd.f32 %v1669_v46, %v1629_v14  ;;  %v1702_v39 = vadd.f32 %v1669_v46, %v1630_v26  ;;  %v1703_v37 = vadd.f32 %v1669_v46, %v1631_v33  ;;  %v1704_v12 = vadd.f32 %v1669_v46, %v1632_v51  ;;  %v1744_v52 = vld [vmem:[%s3765_s0 + $0xf8] sm:$0xff] }
 0x7ee   :  { %1825 = vst [vmem:[%s3771_s6 + $0x80] sm:$0xff] %v1793_v53  ;;  %1826 = vst [vmem:[%s3771_s6 + $0x88] sm:$0xff] %v1794_v19  ;;  %v1674_v36 = vpop.permute.xlu0 %1673  ;;  %v1639_v20 = vmul.f32 %v3535_v57, %v3432_v31  ;;  %v1640_v22 = vmul.f32 %v3535_v57, %v3440_v55 }
 0x7ef   :  { %1827 = vst [vmem:[%s3771_s6 + $0x90] sm:$0xff] %v1795_v10  ;;  %1828 = vst [vmem:[%s3771_s6 + $0x98] sm:$0xff] %v1796_v15  ;;  %v1765_v60 = vadd.f32 %v1733_v30, %v1701_v50  ;;  %v1766_v17 = vadd.f32 %v1734_v35, %v1702_v39  ;;  %v1767_v11 = vadd.f32 %v1735_v29, %v1703_v37 }
 0x7f0   :  { %v1768_v43 = vadd.f32 %v1736_v56, %v1704_v12  ;;  %v1705_v9 = vadd.f32 %v1674_v36, %v1633_v21  ;;  %v1706_v4 = vadd.f32 %v1674_v36, %v1634_v6  ;;  %v1707_v3 = vadd.f32 %v1674_v36, %v1635_v8 }
 0x7f1   :  { %v1708_v13 = vadd.f32 %v1674_v36, %v1636_v0  ;;  %v1797_v5 = vmax.f32 %v1765_v60, 0.0  ;;  %v1798_v2 = vmax.f32 %v1766_v17, 0.0  ;;  %v1799_v18 = vmax.f32 %v1767_v11, 0.0 }
 0x7f2   :  { %v1800_v49 = vmax.f32 %v1768_v43, 0.0  ;;  %v1769_v63 = vadd.f32 %v1737_v59, %v1705_v9  ;;  %v1770_v23 = vadd.f32 %v1738_v62, %v1706_v4  ;;  %v1771_v27 = vadd.f32 %v1739_v38, %v1707_v3 }
 0x7f3   :  { %v1772_v25 = vadd.f32 %v1740_v42, %v1708_v13  ;;  %1829 = vst [vmem:[%s3771_s6 + $0xa0] sm:$0xff] %v1797_v5  ;;  %1830 = vst [vmem:[%s3771_s6 + $0xa8] sm:$0xff] %v1798_v2 }
 0x7f4   :  { %1831 = vst [vmem:[%s3771_s6 + $0xb0] sm:$0xff] %v1799_v18  ;;  %1832 = vst [vmem:[%s3771_s6 + $0xb8] sm:$0xff] %v1800_v49  ;;  %v1801_v34 = vmax.f32 %v1769_v63, 0.0  ;;  %v1802_v16 = vmax.f32 %v1770_v23, 0.0  ;;  %v1803_v7 = vmax.f32 %v1771_v27, 0.0  ;;  %v1679_v54 = vpop.permute.xlu1 %1678 }
 0x7f5   :  { %v1804_v28 = vmax.f32 %v1772_v25, 0.0  ;;  %v1709_v24 = vadd.f32 %v1679_v54, %v1637_v58  ;;  %v1710_v47 = vadd.f32 %v1679_v54, %v1638_v61  ;;  %v1711_v45 = vadd.f32 %v1679_v54, %v1639_v20 }
 0x7f6   :  { %v1712_v31 = vadd.f32 %v1679_v54, %v1640_v22  ;;  %1833 = vst [vmem:[%s3771_s6 + $0xc0] sm:$0xff] %v1801_v34  ;;  %1834 = vst [vmem:[%s3771_s6 + $0xc8] sm:$0xff] %v1802_v16 }
 0x7f7   :  { %1835 = vst [vmem:[%s3771_s6 + $0xd0] sm:$0xff] %v1803_v7  ;;  %1836 = vst [vmem:[%s3771_s6 + $0xd8] sm:$0xff] %v1804_v28  ;;  %v1773_v55 = vadd.f32 %v1741_v1, %v1709_v24  ;;  %v1774_v57 = vadd.f32 %v1742_v48, %v1710_v47  ;;  %v1775_v44 = vadd.f32 %v1743_v32, %v1711_v45 }
 0x7f8   :  { %v1776_v41 = vadd.f32 %v1744_v52, %v1712_v31 }
 0x7f9   :  { %v1805_v40 = vmax.f32 %v1773_v55, 0.0  ;;  %v1806_v14 = vmax.f32 %v1774_v57, 0.0  ;;  %v1807_v26 = vmax.f32 %v1775_v44, 0.0 }
 0x7fa   :  { %v1808_v33 = vmax.f32 %v1776_v41, 0.0 }
 0x7fb   :  { %1837 = vst [vmem:[%s3771_s6 + $0xe0] sm:$0xff] %v1805_v40  ;;  %1838 = vst [vmem:[%s3771_s6 + $0xe8] sm:$0xff] %v1806_v14 }
 0x7fc   :  { %1839 = vst [vmem:[%s3771_s6 + $0xf0] sm:$0xff] %v1807_v26  ;;  %1840 = vst [vmem:[%s3771_s6 + $0xf8] sm:$0xff] %v1808_v33 }

</bundles_post_ra>
